<compile_context>
chip_gen: v6e
topology: v6e:2x2x1
jax: 0.10.0
libtpu: 0.0.40
codegen_flags: <defaults>
</compile_context>

<pallas_src>
import jax
import jax.numpy as jnp
from jax.experimental import pallas as pl
from jax.experimental.pallas import tpu as pltpu

LANE = 128    # TPU lane width; batch tiles live on the lane axis
IN_PAD = 8    # 3 input features zero-padded to 8 sublanes
OUT_PAD = 8   # 7 outputs zero-padded to 8 sublanes


def _round_up(n, m):
    return ((n + m - 1) // m) * m


def _mlp_kernel(x_ref, w1_ref, b1_ref, w2_ref, b2_ref,
                w3_ref, b3_ref, w4_ref, b4_ref, o_ref):
    # Transposed layout: activations are (features, TB); batch is the lane axis.
    x = x_ref[...]                                          # (8, TB) f32, rows 3..7 zero

    # Layer 1 (3->32) on the MXU with zero-padded K=8, f32.
    h = jnp.dot(w1_ref[...], x, preferred_element_type=jnp.float32) + b1_ref[...]
    h = jnp.maximum(h, 0.0)                                 # (32, TB)

    # Layers 2-3: bf16 MXU operands, f32 accumulation, f32 bias/ReLU.
    h = jnp.dot(w2_ref[...], h.astype(jnp.bfloat16),
                preferred_element_type=jnp.float32) + b2_ref[...]
    h = jnp.maximum(h, 0.0)                                 # (64, TB)

    h = jnp.dot(w3_ref[...], h.astype(jnp.bfloat16),
                preferred_element_type=jnp.float32) + b3_ref[...]
    h = jnp.maximum(h, 0.0)                                 # (256, TB)

    # Layer 4 (256->7, padded to 8 output rows) kept f32 for closer parity.
    out = jnp.dot(w4_ref[...], h, preferred_element_type=jnp.float32) + b4_ref[...]

    # Compact, fully lane-dense (8, TB) store; rows [0:7] are the real outputs.
    o_ref[...] = out.astype(o_ref.dtype)


def reference_forward(x, params):
    """Pure-f32 reference matching the PyTorch module semantics (also the tiny-batch path)."""
    h = x
    for i in range(1, 4):
        h = jnp.maximum(h @ params[f"w{i}"] + params[f"b{i}"], 0.0)
    return h @ params["w4"] + params["b4"]


def predicter_forward(x, params, tb=4096, min_pallas_batch=512):
    """x: [B, 3] float32.  params: dict of (w1,b1,...,w4,b4).  Returns [B, 7] float32."""
    B = x.shape[0]
    if B < min_pallas_batch:
        # At tiny batches the call is dominated by launch + padding; let XLA fuse it.
        return reference_forward(x.astype(jnp.float32), params)

    # --- batch tile selection ---
    tb = max(LANE, _round_up(tb, LANE))
    B_lane = _round_up(B, LANE)
    TB = min(tb, B_lane)
    if B_lane >= 2 * LANE:
        # Guarantee at least 2 grid steps so both v7x TensorCores get work.
        TB = min(TB, _round_up(B_lane // 2, LANE))
    B_pad = _round_up(B, TB)
    grid = (B_pad // TB,)

    # --- operand prep (wrapper-side, fused / constant-folded by XLA under jit) ---
    # Input transposed to (features, batch) and zero-padded 3 -> 8 rows.
    xT = jnp.zeros((IN_PAD, B_pad), jnp.float32).at[:3, :B].set(
        x.astype(jnp.float32).T)

    w1 = jnp.zeros((32, IN_PAD), jnp.float32).at[:, :3].set(
        params["w1"].T.astype(jnp.float32))                     # (32, 8)
    b1 = params["b1"].astype(jnp.float32).reshape(32, 1)
    w2 = params["w2"].T.astype(jnp.bfloat16)                    # (64, 32)
    b2 = params["b2"].astype(jnp.float32).reshape(64, 1)
    w3 = params["w3"].T.astype(jnp.bfloat16)                    # (256, 64)
    b3 = params["b3"].astype(jnp.float32).reshape(256, 1)
    w4 = jnp.zeros((OUT_PAD, 256), jnp.float32).at[:7, :].set(
        params["w4"].T.astype(jnp.float32))                     # (8, 256)
    b4 = jnp.zeros((OUT_PAD, 1), jnp.float32).at[:7, :].set(
        params["b4"].astype(jnp.float32).reshape(7, 1))

    def const_spec(shape):
        # Weights/biases stay VMEM-resident: constant block index across the grid.
        return pl.BlockSpec(shape, lambda i: (0, 0))

    in_specs = [
        pl.BlockSpec((IN_PAD, TB), lambda i: (0, i)),   # x: tiled over batch (lanes)
        const_spec(w1.shape), const_spec(b1.shape),
        const_spec(w2.shape), const_spec(b2.shape),
        const_spec(w3.shape), const_spec(b3.shape),
        const_spec(w4.shape), const_spec(b4.shape),
    ]
    out_specs = pl.BlockSpec((OUT_PAD, TB), lambda i: (0, i))

    weight_bytes = sum(int(a.size) * a.dtype.itemsize
                       for a in (w1, b1, w2, b2, w3, b3, w4, b4))
    cost = pl.CostEstimate(
        flops=2 * B_pad * (IN_PAD * 32 + 32 * 64 + 64 * 256 + 256 * OUT_PAD),
        transcendentals=0,
        bytes_accessed=B_pad * IN_PAD * 4 + B_pad * OUT_PAD * 4 + weight_bytes,
    )

    outT = pl.pallas_call(
        _mlp_kernel,
        out_shape=jax.ShapeDtypeStruct((OUT_PAD, B_pad), jnp.float32),
        grid=grid,
        in_specs=in_specs,
        out_specs=out_specs,
        compiler_params=pltpu.CompilerParams(
            dimension_semantics=("parallel",),
            vmem_limit_bytes=32 * 1024 * 1024,
        ),
        cost_estimate=cost,
    )(xT, w1, b1, w2, b2, w3, b3, w4, b4)

    # Compact slab -> (B, 7).  Only 32 B per batch element get re-read here
    # (vs. 512 B/elem with the previous (B_pad, 128) padded layout).
    return outT[:7, :B].T


def init_params(key):
    """Deterministic init mimicking PyTorch nn.Linear default (U(-1/sqrt(fan_in), +))."""
    dims = [(3, 32), (32, 64), (64, 256), (256, 7)]
    params = {}
    for idx, (fan_in, fan_out) in enumerate(dims, start=1):
        key, kw, kb = jax.random.split(key, 3)
        bound = 1.0 / jnp.sqrt(jnp.float32(fan_in))
        # Stored as [in, out]; the kernel uses the transposed copies.
        params[f"w{idx}"] = jax.random.uniform(
            kw, (fan_in, fan_out), jnp.float32, -bound, bound)
        params[f"b{idx}"] = jax.random.uniform(
            kb, (1, fan_out), jnp.float32, -bound, bound)
    return params


if __name__ == "__main__":
    key = jax.random.PRNGKey(0)
    key, kx = jax.random.split(key)

    # Large enough to take the Pallas path (>= 512); non-multiple-of-128 exercises
    # the batch padding and the >= 2-grid-step (megacore) tile selection.
    B = 777
    x = jax.random.normal(kx, (B, 3), jnp.float32)
    params = init_params(key)

    fwd = jax.jit(predicter_forward)
    out = jax.block_until_ready(fwd(x, params))

    ref = reference_forward(x, params)
    assert out.shape == (B, 7), out.shape
    # Layers 2-3 use bf16 MXU operands (f32 accumulation) vs the f32 reference.
    assert jnp.allclose(out, ref, atol=5e-2, rtol=5e-2), "mismatch vs reference"

    print("KERNEL_OK")
</pallas_src>

<mosaic_0001>
module attributes {stable_mosaic.version = 11 : i64} {
  func.func @_mlp_kernel(%arg0: i32, %arg1: memref<8x512xf32, #tpu.memory_space<vmem>>, %arg2: memref<32x8xf32, #tpu.memory_space<vmem>>, %arg3: memref<32x1xf32, #tpu.memory_space<vmem>>, %arg4: memref<64x32xbf16, #tpu.memory_space<vmem>>, %arg5: memref<64x1xf32, #tpu.memory_space<vmem>>, %arg6: memref<256x64xbf16, #tpu.memory_space<vmem>>, %arg7: memref<256x1xf32, #tpu.memory_space<vmem>>, %arg8: memref<8x256xf32, #tpu.memory_space<vmem>>, %arg9: memref<8x1xf32, #tpu.memory_space<vmem>>, %arg10: memref<8x512xf32, #tpu.memory_space<vmem>>) attributes {dimension_semantics = [#tpu.dimension_semantics<parallel>], iteration_bounds = array<i64: 2>, scalar_prefetch = 0 : i64, scratch_operands = 0 : i64, tpu.core_type = #tpu.core_type<tc>, window_params = [{transform_indices = @transform_0, window_bounds = array<i64: 8, 512>}, {pipeline_mode = #tpu.pipeline_mode<synchronous>, transform_indices = @transform_1, window_bounds = array<i64: 32, 8>}, {pipeline_mode = #tpu.pipeline_mode<synchronous>, transform_indices = @transform_2, window_bounds = array<i64: 32, 1>}, {pipeline_mode = #tpu.pipeline_mode<synchronous>, transform_indices = @transform_3, window_bounds = array<i64: 64, 32>}, {pipeline_mode = #tpu.pipeline_mode<synchronous>, transform_indices = @transform_4, window_bounds = array<i64: 64, 1>}, {pipeline_mode = #tpu.pipeline_mode<synchronous>, transform_indices = @transform_5, window_bounds = array<i64: 256, 64>}, {pipeline_mode = #tpu.pipeline_mode<synchronous>, transform_indices = @transform_6, window_bounds = array<i64: 256, 1>}, {pipeline_mode = #tpu.pipeline_mode<synchronous>, transform_indices = @transform_7, window_bounds = array<i64: 8, 256>}, {pipeline_mode = #tpu.pipeline_mode<synchronous>, transform_indices = @transform_8, window_bounds = array<i64: 8, 1>}, {transform_indices = @transform_9, window_bounds = array<i64: 8, 512>}]} {
    %c0 = arith.constant 0 : index
    %c0_0 = arith.constant 0 : index
    %0 = vector.load %arg1[%c0, %c0_0] : memref<8x512xf32, #tpu.memory_space<vmem>>, vector<8x512xf32>
    %c0_1 = arith.constant 0 : index
    %c0_2 = arith.constant 0 : index
    %1 = vector.load %arg2[%c0_1, %c0_2] : memref<32x8xf32, #tpu.memory_space<vmem>>, vector<32x8xf32>
    %cst = arith.constant dense<0.000000e+00> : vector<32x512xf32>
    %2 = tpu.matmul %1, %0, %cst {dimension_numbers = #tpu.dot_dimension_numbers<[1], [0], [0], [1], [0, 0, 1, 1], [], []>} : vector<32x8xf32>, vector<8x512xf32>, vector<32x512xf32> -> vector<32x512xf32>
    %c0_3 = arith.constant 0 : index
    %c0_4 = arith.constant 0 : index
    %3 = vector.load %arg3[%c0_3, %c0_4] : memref<32x1xf32, #tpu.memory_space<vmem>>, vector<32x1xf32>
    %4 = vector.broadcast %3 : vector<32x1xf32> to vector<32x512xf32>
    %5 = arith.addf %2, %4 : vector<32x512xf32>
    %cst_5 = arith.constant 0.000000e+00 : f32
    %6 = vector.broadcast %cst_5 : f32 to vector<32x512xf32>
    %7 = arith.maximumf %5, %6 : vector<32x512xf32>
    %c0_6 = arith.constant 0 : index
    %c0_7 = arith.constant 0 : index
    %8 = vector.load %arg4[%c0_6, %c0_7] : memref<64x32xbf16, #tpu.memory_space<vmem>>, vector<64x32xbf16>
    %9 = arith.truncf %7 : vector<32x512xf32> to vector<32x512xbf16>
    %cst_8 = arith.constant dense<0.000000e+00> : vector<64x512xf32>
    %10 = tpu.matmul %8, %9, %cst_8 {dimension_numbers = #tpu.dot_dimension_numbers<[1], [0], [0], [1], [0, 0, 1, 1], [], []>} : vector<64x32xbf16>, vector<32x512xbf16>, vector<64x512xf32> -> vector<64x512xf32>
    %c0_9 = arith.constant 0 : index
    %c0_10 = arith.constant 0 : index
    %11 = vector.load %arg5[%c0_9, %c0_10] : memref<64x1xf32, #tpu.memory_space<vmem>>, vector<64x1xf32>
    %12 = vector.broadcast %11 : vector<64x1xf32> to vector<64x512xf32>
    %13 = arith.addf %10, %12 : vector<64x512xf32>
    %cst_11 = arith.constant 0.000000e+00 : f32
    %14 = vector.broadcast %cst_11 : f32 to vector<64x512xf32>
    %15 = arith.maximumf %13, %14 : vector<64x512xf32>
    %c0_12 = arith.constant 0 : index
    %c0_13 = arith.constant 0 : index
    %16 = vector.load %arg6[%c0_12, %c0_13] : memref<256x64xbf16, #tpu.memory_space<vmem>>, vector<256x64xbf16>
    %17 = arith.truncf %15 : vector<64x512xf32> to vector<64x512xbf16>
    %cst_14 = arith.constant dense<0.000000e+00> : vector<256x512xf32>
    %18 = tpu.matmul %16, %17, %cst_14 {dimension_numbers = #tpu.dot_dimension_numbers<[1], [0], [0], [1], [0, 0, 1, 1], [], []>} : vector<256x64xbf16>, vector<64x512xbf16>, vector<256x512xf32> -> vector<256x512xf32>
    %c0_15 = arith.constant 0 : index
    %c0_16 = arith.constant 0 : index
    %19 = vector.load %arg7[%c0_15, %c0_16] : memref<256x1xf32, #tpu.memory_space<vmem>>, vector<256x1xf32>
    %20 = vector.broadcast %19 : vector<256x1xf32> to vector<256x512xf32>
    %21 = arith.addf %18, %20 : vector<256x512xf32>
    %cst_17 = arith.constant 0.000000e+00 : f32
    %22 = vector.broadcast %cst_17 : f32 to vector<256x512xf32>
    %23 = arith.maximumf %21, %22 : vector<256x512xf32>
    %c0_18 = arith.constant 0 : index
    %c0_19 = arith.constant 0 : index
    %24 = vector.load %arg8[%c0_18, %c0_19] : memref<8x256xf32, #tpu.memory_space<vmem>>, vector<8x256xf32>
    %cst_20 = arith.constant dense<0.000000e+00> : vector<8x512xf32>
    %25 = tpu.matmul %24, %23, %cst_20 {dimension_numbers = #tpu.dot_dimension_numbers<[1], [0], [0], [1], [0, 0, 1, 1], [], []>} : vector<8x256xf32>, vector<256x512xf32>, vector<8x512xf32> -> vector<8x512xf32>
    %c0_21 = arith.constant 0 : index
    %c0_22 = arith.constant 0 : index
    %26 = vector.load %arg9[%c0_21, %c0_22] : memref<8x1xf32, #tpu.memory_space<vmem>>, vector<8x1xf32>
    %27 = vector.broadcast %26 : vector<8x1xf32> to vector<8x512xf32>
    %28 = arith.addf %25, %27 : vector<8x512xf32>
    %c0_23 = arith.constant 0 : index
    %c0_24 = arith.constant 0 : index
    %29 = vector.load %arg10[%c0_23, %c0_24] : memref<8x512xf32, #tpu.memory_space<vmem>>, vector<8x512xf32>
    tpu.vector_store %arg10[%c0_23, %c0_24], %28 {strides = array<i32>} : memref<8x512xf32, #tpu.memory_space<vmem>>, vector<8x512xf32>,
    return
  }
  func.func @transform_0(%arg0: i32) -> (i32, i32) {
    %c0_i32 = arith.constant 0 : i32
    %c0_i32_0 = arith.constant 0 : i32
    return %c0_i32, %arg0 : i32, i32
  }
  func.func @transform_1(%arg0: i32) -> (i32, i32) {
    %c0_i32 = arith.constant 0 : i32
    %c0_i32_0 = arith.constant 0 : i32
    %c0_i32_1 = arith.constant 0 : i32
    return %c0_i32, %c0_i32_0 : i32, i32
  }
  func.func @transform_2(%arg0: i32) -> (i32, i32) {
    %c0_i32 = arith.constant 0 : i32
    %c0_i32_0 = arith.constant 0 : i32
    %c0_i32_1 = arith.constant 0 : i32
    return %c0_i32, %c0_i32_0 : i32, i32
  }
  func.func @transform_3(%arg0: i32) -> (i32, i32) {
    %c0_i32 = arith.constant 0 : i32
    %c0_i32_0 = arith.constant 0 : i32
    %c0_i32_1 = arith.constant 0 : i32
    return %c0_i32, %c0_i32_0 : i32, i32
  }
  func.func @transform_4(%arg0: i32) -> (i32, i32) {
    %c0_i32 = arith.constant 0 : i32
    %c0_i32_0 = arith.constant 0 : i32
    %c0_i32_1 = arith.constant 0 : i32
    return %c0_i32, %c0_i32_0 : i32, i32
  }
  func.func @transform_5(%arg0: i32) -> (i32, i32) {
    %c0_i32 = arith.constant 0 : i32
    %c0_i32_0 = arith.constant 0 : i32
    %c0_i32_1 = arith.constant 0 : i32
    return %c0_i32, %c0_i32_0 : i32, i32
  }
  func.func @transform_6(%arg0: i32) -> (i32, i32) {
    %c0_i32 = arith.constant 0 : i32
    %c0_i32_0 = arith.constant 0 : i32
    %c0_i32_1 = arith.constant 0 : i32
    return %c0_i32, %c0_i32_0 : i32, i32
  }
  func.func @transform_7(%arg0: i32) -> (i32, i32) {
    %c0_i32 = arith.constant 0 : i32
    %c0_i32_0 = arith.constant 0 : i32
    %c0_i32_1 = arith.constant 0 : i32
    return %c0_i32, %c0_i32_0 : i32, i32
  }
  func.func @transform_8(%arg0: i32) -> (i32, i32) {
    %c0_i32 = arith.constant 0 : i32
    %c0_i32_0 = arith.constant 0 : i32
    %c0_i32_1 = arith.constant 0 : i32
    return %c0_i32, %c0_i32_0 : i32, i32
  }
  func.func @transform_9(%arg0: i32) -> (i32, i32) {
    %c0_i32 = arith.constant 0 : i32
    %c0_i32_0 = arith.constant 0 : i32
    return %c0_i32, %arg0 : i32, i32
  }
}

</mosaic_0001>

<bundles_post_ra>
// kernel: predicter_forward.1
= control target key start
LH: loop header
LB: loop body
LE: loop exit
PB: predicated region body
PF: predicated region fallthrough
CT: control target
= control target key end

     0   :  { %s2115_s30 = smov 0   ;;  %s2820_s0 = inlined_call_operand.vmem [shape: f32[8,1024], index: 0, kind: input, shape index: {}]   ;;  %s2821_s1 = inlined_call_operand.vmem [shape: f32[32,8], index: 1, kind: input, shape index: {}]   ;;  %s2822_s2 = inlined_call_operand.vmem [shape: f32[32,1], index: 2, kind: input, shape index: {}]   ;;  %s2823_s3 = inlined_call_operand.vmem [shape: bf16[64,32], index: 3, kind: input, shape index: {}]   ;;  %s2824_s4 = inlined_call_operand.vmem [shape: f32[64,1], index: 4, kind: input, shape index: {}]   ;;  %s2825_s5 = inlined_call_operand.vmem [shape: bf16[256,64], index: 5, kind: input, shape index: {}]   ;;  %s2826_s6 = inlined_call_operand.vmem [shape: f32[256,1], index: 6, kind: input, shape index: {}]   ;;  %s2827_s7 = inlined_call_operand.vmem [shape: f32[8,256], index: 7, kind: input, shape index: {}]   ;;  %s2828_s8 = inlined_call_operand.vmem [shape: f32[8,1], index: 8, kind: input, shape index: {}]   ;;  %s2829_s9 = inlined_call_operand.vmem [shape: f32[8,1024], index: 9, kind: output, shape index: {}]  }
   0x1 LB: > { %s1944_s10 = sadd.s32 4294967295, %s2061_s30   ;;  %p1948_p0 = scmp.ge.s32.totalorder %s2061_s30, 1  ;;  %s2061_s30 = sphi %s2115_s30, %s19_s30  }
   0x2   : > { %p288_p1 = scmp.lt.s32.totalorder %s2061_s30, 3 }
   0x4   : > { %p289_p2 = pnand %p1948_p0, %p288_p1 }
   0x6   : > { %292 = sbr.rel (%p289_p2) target bundleno = 1040 (0x410), region = 56 }
   0xb   : > { %v347_v0 = vld [vmem:[%s2822_s2 + $0x10] sm:$0xff]  ;;  %s1949_s13 = sshll.u32 %s1944_s10, 2  ;;  %v345_v1 = vld [vmem:[%s2822_s2] sm:$0xff]  ;;  %v2063_v2 = vmov 0   ;;  %v2064_v3 = vmov 0.0   ;;  %v348_v4 = vld [vmem:[%s2822_s2 + $0x18] sm:$0xff] }
   0xc   : > { %2033 = vset.pattern.permute.xlu0 %v2063_v2  ;;  %2034 = vset.pattern.permute.xlu1 %v2063_v2  ;;  %p325_p3 = scmp.lt.s32.totalorder %s1949_s13, 7  ;;  %v346_v5 = vld [vmem:[%s2822_s2 + $0x8] sm:$0xff]  ;;  %v598_v6 = vld [vmem:[%s2824_s4 + $0x30] sm:$0xff]  ;;  %v341_v7 = vld [vmem:[%s2821_s1] sm:$0xff]  ;;  %vm369_vm0 = vcmask 64512   ;;  %vm660_vm1 = vcmask 261120  }
   0xd   : > { %361 = vperm.xlu0 %2033, %v347_v0   ;;  %446 = vmatprep.mubr.f32.mxu0 %v2064_v3  ;;  %v599_v12 = vld [vmem:[%s2824_s4 + $0x38] sm:$0xff]  ;;  %v596_v13 = vld [vmem:[%s2824_s4 + $0x20] sm:$0xff]  ;;  %v342_v14 = vld [vmem:[%s2821_s1 + $0x8] sm:$0xff]  ;;  %vm1171_vm2 = vcmask 523264  }
   0xe   : > { %s2927_s13 = smov (!%p325_p3, %s1949_s13), 7  ;;  %535 = vmatprep.mubr.f32.mxu1 %v2064_v3  ;;  %351 = vperm.xlu1 %2034, %v345_v1   ;;  %v597_v15 = vld [vmem:[%s2824_s4 + $0x28] sm:$0xff]  ;;  %v594_v16 = vld [vmem:[%s2824_s4 + $0x10] sm:$0xff]  ;;  %v592_v18 = vld [vmem:[%s2824_s4] sm:$0xff] }
   0xf   : > { %s1950_s20 = sshll.u32 %s2927_s13, 3  ;;  %v343_v17 = vld [vmem:[%s2821_s1 + $0x10] sm:$0xff]  ;;  %v344_v19 = vld [vmem:[%s2821_s1 + $0x18] sm:$0xff]  ;;  %v593_v21 = vld [vmem:[%s2824_s4 + $0x8] sm:$0xff] }
  0x10   : > { %s328_s23 = scalar_lea.vmem %s2820_s0, %s1950_s20  ;;  %v595_v20 = vld [vmem:[%s2824_s4 + $0x18] sm:$0xff]  ;;  %v913_v23 = vld [vmem:[%s2826_s6 + $0x70] sm:$0xff]  ;;  %v912_v24 = vld [vmem:[%s2826_s6 + $0x68] sm:$0xff]  ;;  %s334_s15 = scalar_lea.vmem %s2829_s9, %s1950_s20 }
  0x11   : > { %366 = vperm.xlu0 %2033, %v348_v4   ;;  %v338_v8 = vld [vmem:[%s328_s23 + $0x8] sm:$0xff]  ;;  %v340_v9 = vld [vmem:[%s328_s23 + $0x18] sm:$0xff]  ;;  %v337_v10 = vld [vmem:[%s328_s23] sm:$0xff] }
  0x12   : > { %356 = vperm.xlu1 %2034, %v346_v5   ;;  %412 = vmatprep.subr.mxu0 %v338_v8  ;;  %v339_v11 = vld [vmem:[%s328_s23 + $0x10] sm:$0xff]  ;;  %v914_v22 = vld [vmem:[%s2826_s6 + $0x78] sm:$0xff]  ;;  %v911_v25 = vld [vmem:[%s2826_s6 + $0x60] sm:$0xff] }
  0x13   : > { %501 = vmatprep.subr.mxu1 %v340_v9  ;;  %413 = vmatpush1.msra.mxu0 %v337_v10  ;;  %v910_v26 = vld [vmem:[%s2826_s6 + $0x58] sm:$0xff]  ;;  %v909_v27 = vld [vmem:[%s2826_s6 + $0x50] sm:$0xff]  ;;  %v908_v28 = vld [vmem:[%s2826_s6 + $0x48] sm:$0xff] }
  0x14   : > { %502 = vmatpush1.msra.mxu1 %v339_v11  ;;  %1953 = vmatmul.mubr.msk.f32.vlgmr.msra.gmra.mxu0 %vm369_vm0, %v341_v7  ;;  %v907_v29 = vld [vmem:[%s2826_s6 + $0x40] sm:$0xff]  ;;  %v906_v30 = vld [vmem:[%s2826_s6 + $0x38] sm:$0xff]  ;;  %v905_v31 = vld [vmem:[%s2826_s6 + $0x30] sm:$0xff] }
  0x15   : > { %632 = vperm.xlu0 %2033, %v598_v6   ;;  %1957 = vmatmul.mubr.msk.f32.vlgmr.msra.gmra.mxu1 %vm369_vm0, %v341_v7  ;;  %v904_v32 = vld [vmem:[%s2826_s6 + $0x28] sm:$0xff]  ;;  %v903_v33 = vld [vmem:[%s2826_s6 + $0x20] sm:$0xff]  ;;  %v902_v34 = vld [vmem:[%s2826_s6 + $0x18] sm:$0xff] }
  0x16   : > { %452 = vmatprep.mubr.f32.mxu0 %v2064_v3  ;;  %541 = vmatprep.mubr.f32.mxu1 %v2064_v3  ;;  %v901_v35 = vld [vmem:[%s2826_s6 + $0x10] sm:$0xff]  ;;  %v900_v36 = vld [vmem:[%s2826_s6 + $0x8] sm:$0xff]  ;;  %v899_v37 = vld [vmem:[%s2826_s6] sm:$0xff] }
  0x17   : > { %637 = vperm.xlu1 %2034, %v599_v12   ;;  %v930_v38 = vld [vmem:[%s2826_s6 + $0xf8] sm:$0xff]  ;;  %v929_v39 = vld [vmem:[%s2826_s6 + $0xf0] sm:$0xff]  ;;  %v928_v40 = vld [vmem:[%s2826_s6 + $0xe8] sm:$0xff] }
  0x18   : > { %1954 = vmatmul.mubr.msk.f32.gmra.mxu0 %vm369_vm0, %v342_v14  ;;  %v927_v41 = vld [vmem:[%s2826_s6 + $0xe0] sm:$0xff]  ;;  %v926_v42 = vld [vmem:[%s2826_s6 + $0xd8] sm:$0xff]  ;;  %v925_v43 = vld [vmem:[%s2826_s6 + $0xd0] sm:$0xff] }
  0x19   : > { %622 = vperm.xlu0 %2033, %v596_v13   ;;  %1958 = vmatmul.mubr.msk.f32.gmra.mxu1 %vm369_vm0, %v342_v14  ;;  %v924_v44 = vld [vmem:[%s2826_s6 + $0xc8] sm:$0xff]  ;;  %v923_v45 = vld [vmem:[%s2826_s6 + $0xc0] sm:$0xff]  ;;  %v922_v46 = vld [vmem:[%s2826_s6 + $0xb8] sm:$0xff] }
  0x1a   : > { %458 = vmatprep.mubr.f32.mxu0 %v2064_v3  ;;  %547 = vmatprep.mubr.f32.mxu1 %v2064_v3  ;;  %v921_v47 = vld [vmem:[%s2826_s6 + $0xb0] sm:$0xff]  ;;  %v920_v48 = vld [vmem:[%s2826_s6 + $0xa8] sm:$0xff]  ;;  %v919_v49 = vld [vmem:[%s2826_s6 + $0xa0] sm:$0xff] }
  0x1b   : > { %627 = vperm.xlu1 %2034, %v597_v15   ;;  %v918_v50 = vld [vmem:[%s2826_s6 + $0x98] sm:$0xff]  ;;  %v917_v51 = vld [vmem:[%s2826_s6 + $0x90] sm:$0xff]  ;;  %v916_v52 = vld [vmem:[%s2826_s6 + $0x88] sm:$0xff] }
  0x1c   : > { %1955 = vmatmul.mubr.msk.f32.gmra.mxu0 %vm369_vm0, %v343_v17  ;;  %v915_v53 = vld [vmem:[%s2826_s6 + $0x80] sm:$0xff] }
  0x1d   : > { %612 = vperm.xlu0 %2033, %v594_v16   ;;  %1959 = vmatmul.mubr.msk.f32.gmra.mxu1 %vm369_vm0, %v343_v17  ;;  %v1736_v54 = vld [vmem:[%s2828_s8] sm:$0xff] }
  0x1e   : > { %464 = vmatprep.mubr.f32.mxu0 %v2064_v3  ;;  %553 = vmatprep.mubr.f32.mxu1 %v2064_v3 }
  0x1f   : > { %617 = vperm.xlu1 %2034, %v595_v20  }
  0x20   : > { %1956 = vmatmul.mubr.msk.f32.gmra.mxu0 %vm369_vm0, %v344_v19 }
  0x21   : > { %602 = vperm.xlu0 %2033, %v592_v18   ;;  %1960 = vmatmul.mubr.msk.f32.gmra.mxu1 %vm369_vm0, %v344_v19 }
  0x22   : > { %705 = vmatprep.mubr.bf16.mxu0 %v2063_v2  ;;  %778 = vmatprep.mubr.bf16.mxu1 %v2063_v2 }
  0x23   : > { %607 = vperm.xlu1 %2034, %v593_v21  }
  0x25   : > { %1008 = vperm.xlu0 %2033, %v914_v22  }
  0x27   : > { %1003 = vperm.xlu1 %2034, %v913_v23  }
  0x29   : > { %998 = vperm.xlu0 %2033, %v912_v24  }
  0x2b   : > { %993 = vperm.xlu1 %2034, %v911_v25  }
  0x2d   : > { %988 = vperm.xlu0 %2033, %v910_v26  }
  0x2f   : > { %983 = vperm.xlu1 %2034, %v909_v27  }
  0x31   : > { %978 = vperm.xlu0 %2033, %v908_v28  }
  0x33   : > { %973 = vperm.xlu1 %2034, %v907_v29  }
  0x35   : > { %968 = vperm.xlu0 %2033, %v906_v30  }
  0x37   : > { %963 = vperm.xlu1 %2034, %v905_v31  }
  0x39   : > { %958 = vperm.xlu0 %2033, %v904_v32  }
  0x3b   : > { %953 = vperm.xlu1 %2034, %v903_v33  }
  0x3d   : > { %948 = vperm.xlu0 %2033, %v902_v34  }
  0x3f   : > { %943 = vperm.xlu1 %2034, %v901_v35  }
  0x41   : > { %938 = vperm.xlu0 %2033, %v900_v36  }
  0x43   : > { %933 = vperm.xlu1 %2034, %v899_v37  }
  0x45   : > { %1088 = vperm.xlu0 %2033, %v930_v38  }
  0x47   : > { %1083 = vperm.xlu1 %2034, %v929_v39  }
  0x49   : > { %1078 = vperm.xlu0 %2033, %v928_v40  }
  0x4b   : > { %1073 = vperm.xlu1 %2034, %v927_v41  }
  0x4d   : > { %1068 = vperm.xlu0 %2033, %v926_v42  }
  0x4f   : > { %1063 = vperm.xlu1 %2034, %v925_v43  }
  0x51   : > { %1058 = vperm.xlu0 %2033, %v924_v44  }
  0x53   : > { %1053 = vperm.xlu1 %2034, %v923_v45  }
  0x55   : > { %1048 = vperm.xlu0 %2033, %v922_v46  }
  0x57   : > { %1043 = vperm.xlu1 %2034, %v921_v47  }
  0x59   : > { %1038 = vperm.xlu0 %2033, %v920_v48  }
  0x5b   : > { %1033 = vperm.xlu1 %2034, %v919_v49  }
  0x5d   : > { %1028 = vperm.xlu0 %2033, %v918_v50  }
  0x5f   : > { %1023 = vperm.xlu1 %2034, %v917_v51  }
  0x61   : > { %1018 = vperm.xlu0 %2033, %v916_v52   ;;  %v2035_v52 = vld [vmem:[%s2823_s3] sm:$0xff]  }
  0x63   : > { %1013 = vperm.xlu1 %2034, %v915_v53   ;;  %v2036_v53 = vld [vmem:[%s2823_s3 + $0x8] sm:$0xff]  }
  0x65   : > { %1739 = vperm.xlu0 %2033, %v1736_v54   ;;  %v2037_v54 = vld [vmem:[%s2823_s3 + $0x10] sm:$0xff]  }
  0x88   : > { %v362_v60 = vpop.permute.xlu0 %361 }
  0x89   : > { %v352_v62 = vpop.permute.xlu1 %351 }
  0x8c   : > { %v367_v5 = vpop.permute.xlu0 %366 }
  0x8d   : > { %v357_v7 = vpop.permute.xlu1 %356 }
  0xd4   : > { %v448_v55 = vpop.f32.mrf.mxu0 }
  0xd5   : > { %v537_v56 = vpop.f32.mrf.mxu1  ;;  %v449_v9 = vadd.f32 %v448_v55, %v352_v62  ;;  %v2038_v55 = vld [vmem:[%s2823_s3 + $0x18] sm:$0xff]  }
  0xd6   : > { %v450_v57 = vpop.f32.mrf.mxu0  ;;  %v538_v36 = vadd.f32 %v537_v56, %v352_v62 }
  0xd7   : > { %v539_v58 = vpop.f32.mrf.mxu1  ;;  %v451_v19 = vadd.f32 %v450_v57, %v352_v62  ;;  %v560_v47 = vmax.f32 %v449_v9, 0.0 }
  0xd8   : > { %v454_v59 = vpop.f32.mrf.mxu0  ;;  %v540_v20 = vadd.f32 %v539_v58, %v352_v62  ;;  %v562_v49 = vmax.f32 %v538_v36, 0.0 }
  0xd9   : > { %v543_v61 = vpop.f32.mrf.mxu1  ;;  %v455_v24 = vadd.f32 %v454_v59, %v357_v7  ;;  %v561_v37 = vmax.f32 %v451_v19, 0.0 }
  0xda   : > { %v456_v63 = vpop.f32.mrf.mxu0  ;;  %v544_v25 = vadd.f32 %v543_v61, %v357_v7  ;;  %v563_v40 = vmax.f32 %v540_v20, 0.0 }
  0xdb   : > { %v545_v0 = vpop.f32.mrf.mxu1  ;;  %v457_v10 = vadd.f32 %v456_v63, %v357_v7  ;;  %v564_v41 = vmax.f32 %v455_v24, 0.0  ;;  %v633_v63 = vpop.permute.xlu0 %632 }
  0xdc   : > { %v460_v1 = vpop.f32.mrf.mxu0  ;;  %v546_v14 = vadd.f32 %v545_v0, %v357_v7  ;;  %v566_v44 = vmax.f32 %v544_v25, 0.0 }
  0xdd   : > { %v549_v3 = vpop.f32.mrf.mxu1  ;;  %v461_v15 = vadd.f32 %v460_v1, %v362_v60  ;;  %v565_v28 = vmax.f32 %v457_v10, 0.0  ;;  %v584_v50 = vpack.c.bf16 %v564_v41, %v560_v47  ;;  %v638_v1 = vpop.permute.xlu1 %637 }
  0xde   : > { %v462_v4 = vpop.f32.mrf.mxu0  ;;  %v550_v21 = vadd.f32 %v549_v3, %v362_v60  ;;  %v567_v32 = vmax.f32 %v546_v14, 0.0  ;;  %v586_v51 = vpack.c.bf16 %v566_v44, %v562_v49 }
  0xdf   : > { %v551_v6 = vpop.f32.mrf.mxu1  ;;  %v463_v11 = vadd.f32 %v462_v4, %v362_v60  ;;  %v568_v33 = vmax.f32 %v461_v15, 0.0  ;;  %v585_v45 = vpack.c.bf16 %v565_v28, %v561_v37 }
  0xe0   : > { %v466_v8 = vpop.f32.mrf.mxu0  ;;  %v552_v16 = vadd.f32 %v551_v6, %v362_v60  ;;  %v570_v38 = vmax.f32 %v550_v21, 0.0  ;;  %v587_v48 = vpack.c.bf16 %v567_v32, %v563_v40 }
  0xe1   : > { %v467_v12 = vadd.f32 %v466_v8, %v367_v5  ;;  %v555_v13 = vpop.f32.mrf.mxu1  ;;  %v569_v29 = vmax.f32 %v463_v11, 0.0  ;;  %v623_v8 = vpop.permute.xlu0 %622 }
  0xe2   : > { %v556_v17 = vadd.f32 %v555_v13, %v367_v5  ;;  %v468_v18 = vpop.f32.mrf.mxu0  ;;  %v571_v34 = vmax.f32 %v552_v16, 0.0  ;;  %v628_v10 = vpop.permute.xlu1 %627 }
  0xe3   : > { %v469_v22 = vadd.f32 %v468_v18, %v367_v5  ;;  %v557_v23 = vpop.f32.mrf.mxu1  ;;  %v572_v26 = vmax.f32 %v467_v12, 0.0 }
  0xe4   : > { %v558_v27 = vadd.f32 %v557_v23, %v367_v5  ;;  %v574_v30 = vmax.f32 %v556_v17, 0.0 }
  0xe5   : > { %v573_v31 = vmax.f32 %v469_v22, 0.0  ;;  %v588_v42 = vpack.c.bf16 %v572_v26, %v568_v33  ;;  %v2330_v16 = vpop.permute.xlu0 %612 }
  0xe6   : > { %v575_v35 = vmax.f32 %v558_v27, 0.0  ;;  %v590_v46 = vpack.c.bf16 %v574_v30, %v570_v38  ;;  %v618_v18 = vpop.permute.xlu1 %617 }
  0xe7   : > { %v589_v39 = vpack.c.bf16 %v573_v31, %v569_v29 }
  0xe8   : > { %v591_v43 = vpack.c.bf16 %v575_v35, %v571_v34 }
  0xe9   : > { %685 = vmatprep.subr.bf16.mxu0 %v589_v39  ;;  %v2332_v24 = vpop.permute.xlu0 %602 }
  0xea   : > { %758 = vmatprep.subr.bf16.mxu1 %v591_v43  ;;  %686 = vmatpush1.bf16.msra.mxu0 %v588_v42  ;;  %v2334_v26 = vpop.permute.xlu1 %607 }
  0xeb   : > { %759 = vmatpush1.bf16.msra.mxu1 %v590_v46  ;;  %687 = vmatprep.subr.bf16.mxu0 %v585_v45 }
  0xec   : > { %760 = vmatprep.subr.bf16.mxu1 %v587_v48 }
  0xee   : > { %688 = vmatpush1.bf16.msra.mxu0 %v584_v50 }
  0xef   : > { %761 = vmatpush1.bf16.msra.mxu1 %v586_v51 }
  0xf1   : > { %1965 = vmatmul.mubr.msk.bf16.vlgmr.msra.gmra.mxu0 %vm660_vm1, %v2035_v52 }
  0xf2   : > { %1969 = vmatmul.mubr.msk.bf16.vlgmr.msra.gmra.mxu1 %vm660_vm1, %v2035_v52  ;;  %715 = vmatprep.mubr.bf16.mxu0 %v2063_v2 }
  0xf3   : > { %788 = vmatprep.mubr.bf16.mxu1 %v2063_v2 }
  0xf9   : > { %1966 = vmatmul.mubr.msk.bf16.gmra.mxu0 %vm660_vm1, %v2036_v53 }
  0xfa   : > { %1970 = vmatmul.mubr.msk.bf16.gmra.mxu1 %vm660_vm1, %v2036_v53  ;;  %725 = vmatprep.mubr.bf16.mxu0 %v2063_v2 }
  0xfb   : > { %798 = vmatprep.mubr.bf16.mxu1 %v2063_v2 }
 0x101   : > { %1967 = vmatmul.mubr.msk.bf16.gmra.mxu0 %vm660_vm1, %v2037_v54 }
 0x102   : > { %1971 = vmatmul.mubr.msk.bf16.gmra.mxu1 %vm660_vm1, %v2037_v54  ;;  %735 = vmatprep.mubr.bf16.mxu0 %v2063_v2 }
 0x103   : > { %808 = vmatprep.mubr.bf16.mxu1 %v2063_v2 }
 0x109   : > { %1968 = vmatmul.mubr.msk.bf16.gmra.mxu0 %vm660_vm1, %v2038_v55 }
 0x10a   : > { %1972 = vmatmul.mubr.msk.bf16.gmra.mxu1 %vm660_vm1, %v2038_v55  ;;  %1252 = vmatprep.mubr.bf16.mxu0 %v2063_v2 }
 0x10b   : > { %1445 = vmatprep.mubr.bf16.mxu1 %v2063_v2 }
 0x1b1   : > { %v2318_v56 = vpop.f32.mrf.mxu0 }
 0x1b2   : > { %v2320_v57 = vpop.f32.mrf.mxu1 }
 0x1b3   : > { %v709_v58 = vpop.f32.mrf.mxu0 }
 0x1b4   : > { %v782_v59 = vpop.f32.mrf.mxu1  ;;  %v2337_v27 = vadd.f32 %v709_v58, %v2332_v24 }
 0x1b5   : > { %v2322_v60 = vpop.f32.mrf.mxu0  ;;  %v2340_v28 = vadd.f32 %v782_v59, %v2332_v24 }
 0x1b6   : > { %v2324_v61 = vpop.f32.mrf.mxu1 }
 0x1b7   : > { %v713_v62 = vpop.f32.mrf.mxu0 }
 0x1b8   : > { %v786_v0 = vpop.f32.mrf.mxu1  ;;  %v2343_v30 = vadd.f32 %v713_v62, %v2334_v26 }
 0x1b9   : > { %v2326_v3 = vpop.f32.mrf.mxu0  ;;  %v2346_v31 = vadd.f32 %v786_v0, %v2334_v26 }
 0x1ba   : > { %v2328_v4 = vpop.f32.mrf.mxu1 }
 0x1bb   : > { %v719_v5 = vpop.f32.mrf.mxu0 }
 0x1bc   : > { %v792_v6 = vpop.f32.mrf.mxu1  ;;  %v2349_v32 = vadd.f32 %v719_v5, %v2330_v16 }
 0x1bd   : > { %v721_v7 = vpop.f32.mrf.mxu0  ;;  %v2352_v33 = vadd.f32 %v792_v6, %v2330_v16 }
 0x1be   : > { %v794_v9 = vpop.f32.mrf.mxu1  ;;  %v2354_v35 = vadd.f32 %v721_v7, %v618_v18 }
 0x1bf   : > { %v723_v11 = vpop.f32.mrf.mxu0  ;;  %v2356_v36 = vadd.f32 %v794_v9, %v618_v18 }
 0x1c0   : > { %v796_v12 = vpop.f32.mrf.mxu1  ;;  %v2358_v37 = vadd.f32 %v723_v11, %v618_v18 }
 0x1c1   : > { %v727_v13 = vpop.f32.mrf.mxu0  ;;  %v2360_v38 = vadd.f32 %v796_v12, %v618_v18 }
 0x1c2   : > { %v800_v14 = vpop.f32.mrf.mxu1  ;;  %v728_v40 = vadd.f32 %v727_v13, %v623_v8 }
 0x1c3   : > { %v729_v15 = vpop.f32.mrf.mxu0  ;;  %v801_v18 = vadd.f32 %v800_v14, %v623_v8  ;;  %v712_v14 = vadd.f32 %v2322_v60, %v2334_v26  ;;  %v833_v60 = vmax.f32 %v2356_v36, 0.0 }
 0x1c4   : > { %v802_v17 = vpop.f32.mrf.mxu1  ;;  %v730_v50 = vadd.f32 %v729_v15, %v623_v8 }
 0x1c5   : > { %v731_v19 = vpop.f32.mrf.mxu0  ;;  %v803_v51 = vadd.f32 %v802_v17, %v623_v8 }
 0x1c6   : > { %v804_v20 = vpop.f32.mrf.mxu1  ;;  %v732_v55 = vadd.f32 %v731_v19, %v628_v10 }
 0x1c7   : > { %v733_v21 = vpop.f32.mrf.mxu0  ;;  %v805_v58 = vadd.f32 %v804_v20, %v628_v10  ;;  %v838_v17 = vmax.f32 %v803_v51, 0.0 }
 0x1c8   : > { %v806_v22 = vpop.f32.mrf.mxu1  ;;  %v734_v41 = vadd.f32 %v733_v21, %v628_v10  ;;  %v836_v21 = vmax.f32 %v730_v50, 0.0 }
 0x1c9   : > { %v737_v23 = vpop.f32.mrf.mxu0  ;;  %v807_v45 = vadd.f32 %v806_v22, %v628_v10  ;;  %v832_v10 = vmax.f32 %v2358_v37, 0.0  ;;  %v841_v19 = vmax.f32 %v805_v58, 0.0  ;;  %v828_v37 = vmax.f32 %v2349_v32, 0.0  ;;  %v2045_v58 = vld [vmem:[%s2825_s5 + $0x30] sm:$0xff]  }
 0x1ca   : > { %v810_v25 = vpop.f32.mrf.mxu1  ;;  %v738_v46 = vadd.f32 %v737_v23, %v633_v63  ;;  %v840_v0 = vmax.f32 %v734_v41, 0.0  ;;  %v791_v41 = vadd.f32 %v2328_v4, %v2330_v16  ;;  %v826_v32 = vmax.f32 %v2346_v31, 0.0 }
 0x1cb   : > { %v739_v29 = vpop.f32.mrf.mxu0  ;;  %v811_v52 = vadd.f32 %v810_v25, %v633_v63  ;;  %v842_v9 = vmax.f32 %v807_v45, 0.0  ;;  %v888_v45 = vpack.c.bf16 %v832_v10, %v828_v37 }
 0x1cc   : > { %v812_v34 = vpop.f32.mrf.mxu1  ;;  %v740_v42 = vadd.f32 %v739_v29, %v633_v63  ;;  %v843_v11 = vmax.f32 %v738_v46, 0.0  ;;  %v718_v29 = vadd.f32 %v2326_v3, %v2330_v16  ;;  %v785_v3 = vadd.f32 %v2324_v61, %v2334_v26 }
 0x1cd   : > { %v741_v39 = vpop.f32.mrf.mxu0  ;;  %v813_v47 = vadd.f32 %v812_v34, %v633_v63  ;;  %v845_v22 = vmax.f32 %v811_v52, 0.0  ;;  %v839_v63 = vmax.f32 %v732_v55, 0.0  ;;  %v834_v34 = vmax.f32 %v2360_v38, 0.0  ;;  %v2041_v52 = vld [vmem:[%s2825_s5 + $0x10] sm:$0xff]   ;;  %v2044_v55 = vld [vmem:[%s2825_s5 + $0x28] sm:$0xff]  }
 0x1ce   : > { %v742_v43 = vadd.f32 %v741_v39, %v638_v1  ;;  %v814_v44 = vpop.f32.mrf.mxu1  ;;  %v844_v5 = vmax.f32 %v740_v42, 0.0  ;;  %v835_v39 = vmax.f32 %v728_v40, 0.0  ;;  %v894_v8 = vpack.c.bf16 %v842_v9, %v838_v17  ;;  %v2052_v9 = vld [vmem:[%s2825_s5 + $0x68] sm:$0xff]  }
 0x1cf   : > { %v815_v48 = vadd.f32 %v814_v44, %v638_v1  ;;  %v743_v49 = vpop.f32.mrf.mxu0  ;;  %v846_v12 = vmax.f32 %v813_v47, 0.0  ;;  %v837_v42 = vmax.f32 %v801_v18, 0.0  ;;  %v830_v38 = vmax.f32 %v2352_v33, 0.0 }
 0x1d0   : > { %v744_v53 = vadd.f32 %v743_v49, %v638_v1  ;;  %v816_v54 = vpop.f32.mrf.mxu1  ;;  %v847_v59 = vmax.f32 %v742_v43, 0.0  ;;  %v831_v40 = vmax.f32 %v2354_v35, 0.0  ;;  %v891_v43 = vpack.c.bf16 %v839_v63, %v835_v39 }
 0x1d1   : > { %v817_v62 = vadd.f32 %v816_v54, %v638_v1  ;;  %v849_v6 = vmax.f32 %v815_v48, 0.0  ;;  %v892_v1 = vpack.c.bf16 %v840_v0, %v836_v21  ;;  %v824_v44 = vmax.f32 %v2343_v30, 0.0  ;;  %v2043_v54 = vld [vmem:[%s2825_s5 + $0x20] sm:$0xff]   ;;  %v2048_v0 = vld [vmem:[%s2825_s5 + $0x48] sm:$0xff]  }
 0x1d2   : > { %v848_v7 = vmax.f32 %v744_v53, 0.0  ;;  %v895_v23 = vpack.c.bf16 %v847_v59, %v843_v11  ;;  %v893_v4 = vpack.c.bf16 %v841_v19, %v837_v42  ;;  %v708_v16 = vadd.f32 %v2318_v56, %v2332_v24  ;;  %v2042_v53 = vld [vmem:[%s2825_s5 + $0x18] sm:$0xff]   ;;  %v2053_v11 = vld [vmem:[%s2825_s5 + $0x70] sm:$0xff]  }
 0x1d3   : > { %v850_v13 = vmax.f32 %v817_v62, 0.0  ;;  %v897_v20 = vpack.c.bf16 %v849_v6, %v845_v22  ;;  %v827_v46 = vmax.f32 %v718_v29, 0.0  ;;  %v890_v47 = vpack.c.bf16 %v834_v34, %v830_v38  ;;  %v2046_v59 = vld [vmem:[%s2825_s5 + $0x38] sm:$0xff]   ;;  %v2047_v62 = vld [vmem:[%s2825_s5 + $0x40] sm:$0xff]  }
 0x1d4   : > { %v896_v15 = vpack.c.bf16 %v848_v7, %v844_v5  ;;  %v781_v61 = vadd.f32 %v2320_v57, %v2332_v24  ;;  %v820_v26 = vmax.f32 %v2337_v27, 0.0  ;;  %v829_v33 = vmax.f32 %v791_v41, 0.0  ;;  %v2039_v27 = vld [vmem:[%s2825_s5] sm:$0xff]   ;;  %v2049_v5 = vld [vmem:[%s2825_s5 + $0x50] sm:$0xff]   ;;  %v2050_v6 = vld [vmem:[%s2825_s5 + $0x58] sm:$0xff]  }
 0x1d5   : > { %v898_v25 = vpack.c.bf16 %v850_v13, %v846_v12  ;;  %v822_v30 = vmax.f32 %v2340_v28, 0.0  ;;  %v823_v35 = vmax.f32 %v712_v14, 0.0  ;;  %v887_v36 = vpack.c.bf16 %v831_v40, %v827_v46  ;;  %v2040_v28 = vld [vmem:[%s2825_s5 + $0x8] sm:$0xff]   ;;  %v2051_v7 = vld [vmem:[%s2825_s5 + $0x60] sm:$0xff]   ;;  %v2054_v12 = vld [vmem:[%s2825_s5 + $0x78] sm:$0xff]  }
 0x1d6   : > { %1228 = vmatprep.subr.bf16.mxu0 %v896_v15  ;;  %v825_v48 = vmax.f32 %v785_v3, 0.0  ;;  %v884_v56 = vpack.c.bf16 %v824_v44, %v820_v26  ;;  %v889_v49 = vpack.c.bf16 %v833_v60, %v829_v33  ;;  %v819_v31 = vmax.f32 %v708_v16, 0.0  ;;  %v1735_v26 = vld [vmem:[%s2827_s7 + $0x8] sm:$0xff] }
 0x1d7   : > { %1421 = vmatprep.subr.bf16.mxu1 %v898_v25  ;;  %1229 = vmatpush1.bf16.msra.mxu0 %v895_v23  ;;  %v886_v50 = vpack.c.bf16 %v826_v32, %v822_v30  ;;  %v821_v51 = vmax.f32 %v781_v61, 0.0 }
 0x1d8   : > { %1422 = vmatpush1.bf16.msra.mxu1 %v897_v20  ;;  %1230 = vmatprep.subr.bf16.mxu0 %v892_v1  ;;  %v883_v57 = vpack.c.bf16 %v823_v35, %v819_v31 }
 0x1d9   : > { %1423 = vmatprep.subr.bf16.mxu1 %v894_v8  ;;  %v885_v24 = vpack.c.bf16 %v825_v48, %v821_v51 }
 0x1db   : > { %1231 = vmatpush1.bf16.msra.mxu0 %v891_v43 }
 0x1dc   : > { %1424 = vmatpush1.bf16.msra.mxu1 %v893_v4  ;;  %1232 = vmatprep.subr.bf16.mxu0 %v888_v45 }
 0x1dd   : > { %1425 = vmatprep.subr.bf16.mxu1 %v890_v47 }
 0x1df   : > { %1233 = vmatpush1.bf16.msra.mxu0 %v887_v36 }
 0x1e0   : > { %1426 = vmatpush1.bf16.msra.mxu1 %v889_v49  ;;  %1234 = vmatprep.subr.bf16.mxu0 %v884_v56 }
 0x1e1   : > { %1427 = vmatprep.subr.bf16.mxu1 %v886_v50 }
 0x1e3   : > { %1235 = vmatpush1.bf16.msra.mxu0 %v883_v57 }
 0x1e4   : > { %1428 = vmatpush1.bf16.msra.mxu1 %v885_v24  ;;  %v1009_v24 = vpop.permute.xlu0 %1008 }
 0x1e6   : > { %1989 = vmatmul.mubr.msk.bf16.vlgmr.msra.gmra.mxu0 %vm1171_vm2, %v2039_v27 }
 0x1e7   : > { %2005 = vmatmul.mubr.msk.bf16.vlgmr.msra.gmra.mxu1 %vm1171_vm2, %v2039_v27  ;;  %1262 = vmatprep.mubr.bf16.mxu0 %v2063_v2 }
 0x1e8   : > { %1455 = vmatprep.mubr.bf16.mxu1 %v2063_v2 }
 0x1ee   : > { %1990 = vmatmul.mubr.msk.bf16.gmra.mxu0 %vm1171_vm2, %v2040_v28 }
 0x1ef   : > { %2006 = vmatmul.mubr.msk.bf16.gmra.mxu1 %vm1171_vm2, %v2040_v28  ;;  %1272 = vmatprep.mubr.bf16.mxu0 %v2063_v2 }
 0x1f0   : > { %1465 = vmatprep.mubr.bf16.mxu1 %v2063_v2 }
 0x1f6   : > { %1991 = vmatmul.mubr.msk.bf16.gmra.mxu0 %vm1171_vm2, %v2041_v52 }
 0x1f7   : > { %2007 = vmatmul.mubr.msk.bf16.gmra.mxu1 %vm1171_vm2, %v2041_v52  ;;  %1282 = vmatprep.mubr.bf16.mxu0 %v2063_v2  ;;  %v1004_v52 = vpop.permute.xlu1 %1003 }
 0x1f8   : > { %1475 = vmatprep.mubr.bf16.mxu1 %v2063_v2 }
 0x1fe   : > { %1992 = vmatmul.mubr.msk.bf16.gmra.mxu0 %vm1171_vm2, %v2042_v53 }
 0x1ff   : > { %2008 = vmatmul.mubr.msk.bf16.gmra.mxu1 %vm1171_vm2, %v2042_v53  ;;  %1292 = vmatprep.mubr.bf16.mxu0 %v2063_v2 }
 0x200   : > { %1485 = vmatprep.mubr.bf16.mxu1 %v2063_v2 }
 0x206   : > { %1993 = vmatmul.mubr.msk.bf16.gmra.mxu0 %vm1171_vm2, %v2043_v54 }
 0x207   : > { %2009 = vmatmul.mubr.msk.bf16.gmra.mxu1 %vm1171_vm2, %v2043_v54  ;;  %1302 = vmatprep.mubr.bf16.mxu0 %v2063_v2 }
 0x208   : > { %1495 = vmatprep.mubr.bf16.mxu1 %v2063_v2 }
 0x20e   : > { %1994 = vmatmul.mubr.msk.bf16.gmra.mxu0 %vm1171_vm2, %v2044_v55 }
 0x20f   : > { %2010 = vmatmul.mubr.msk.bf16.gmra.mxu1 %vm1171_vm2, %v2044_v55  ;;  %1312 = vmatprep.mubr.bf16.mxu0 %v2063_v2 }
 0x210   : > { %1505 = vmatprep.mubr.bf16.mxu1 %v2063_v2 }
 0x216   : > { %1995 = vmatmul.mubr.msk.bf16.gmra.mxu0 %vm1171_vm2, %v2045_v58 }
 0x217   : > { %2011 = vmatmul.mubr.msk.bf16.gmra.mxu1 %vm1171_vm2, %v2045_v58  ;;  %1322 = vmatprep.mubr.bf16.mxu0 %v2063_v2 }
 0x218   : > { %1515 = vmatprep.mubr.bf16.mxu1 %v2063_v2 }
 0x21e   : > { %1996 = vmatmul.mubr.msk.bf16.gmra.mxu0 %vm1171_vm2, %v2046_v59 }
 0x21f   : > { %2012 = vmatmul.mubr.msk.bf16.gmra.mxu1 %vm1171_vm2, %v2046_v59  ;;  %1332 = vmatprep.mubr.bf16.mxu0 %v2063_v2  ;;  %v999_v59 = vpop.permute.xlu0 %998 }
 0x220   : > { %1525 = vmatprep.mubr.bf16.mxu1 %v2063_v2 }
 0x226   : > { %1997 = vmatmul.mubr.msk.bf16.gmra.mxu0 %vm1171_vm2, %v2047_v62 }
 0x227   : > { %2013 = vmatmul.mubr.msk.bf16.gmra.mxu1 %vm1171_vm2, %v2047_v62  ;;  %1342 = vmatprep.mubr.bf16.mxu0 %v2063_v2 }
 0x228   : > { %1535 = vmatprep.mubr.bf16.mxu1 %v2063_v2 }
 0x22e   : > { %1998 = vmatmul.mubr.msk.bf16.gmra.mxu0 %vm1171_vm2, %v2048_v0 }
 0x22f   : > { %2014 = vmatmul.mubr.msk.bf16.gmra.mxu1 %vm1171_vm2, %v2048_v0  ;;  %1352 = vmatprep.mubr.bf16.mxu0 %v2063_v2 }
 0x230   : > { %1545 = vmatprep.mubr.bf16.mxu1 %v2063_v2 }
 0x236   : > { %1999 = vmatmul.mubr.msk.bf16.gmra.mxu0 %vm1171_vm2, %v2049_v5 }
 0x237   : > { %2015 = vmatmul.mubr.msk.bf16.gmra.mxu1 %vm1171_vm2, %v2049_v5  ;;  %1362 = vmatprep.mubr.bf16.mxu0 %v2063_v2  ;;  %v994_v5 = vpop.permute.xlu1 %993 }
 0x238   : > { %1555 = vmatprep.mubr.bf16.mxu1 %v2063_v2 }
 0x23e   : > { %2000 = vmatmul.mubr.msk.bf16.gmra.mxu0 %vm1171_vm2, %v2050_v6 }
 0x23f   : > { %2016 = vmatmul.mubr.msk.bf16.gmra.mxu1 %vm1171_vm2, %v2050_v6  ;;  %1372 = vmatprep.mubr.bf16.mxu0 %v2063_v2 }
 0x240   : > { %1565 = vmatprep.mubr.bf16.mxu1 %v2063_v2 }
 0x246   : > { %2001 = vmatmul.mubr.msk.bf16.gmra.mxu0 %vm1171_vm2, %v2051_v7 }
 0x247   : > { %2017 = vmatmul.mubr.msk.bf16.gmra.mxu1 %vm1171_vm2, %v2051_v7  ;;  %1382 = vmatprep.mubr.bf16.mxu0 %v2063_v2 }
 0x248   : > { %1575 = vmatprep.mubr.bf16.mxu1 %v2063_v2 }
 0x24e   : > { %2002 = vmatmul.mubr.msk.bf16.gmra.mxu0 %vm1171_vm2, %v2052_v9 }
 0x24f   : > { %2018 = vmatmul.mubr.msk.bf16.gmra.mxu1 %vm1171_vm2, %v2052_v9  ;;  %1392 = vmatprep.mubr.bf16.mxu0 %v2063_v2 }
 0x250   : > { %1585 = vmatprep.mubr.bf16.mxu1 %v2063_v2 }
 0x256   : > { %2003 = vmatmul.mubr.msk.bf16.gmra.mxu0 %vm1171_vm2, %v2053_v11 }
 0x257   : > { %2019 = vmatmul.mubr.msk.bf16.gmra.mxu1 %vm1171_vm2, %v2053_v11  ;;  %1402 = vmatprep.mubr.bf16.mxu0 %v2063_v2 }
 0x258   : > { %1595 = vmatprep.mubr.bf16.mxu1 %v2063_v2 }
 0x25e   : > { %2004 = vmatmul.mubr.msk.bf16.gmra.mxu0 %vm1171_vm2, %v2054_v12 }
 0x25f   : > { %2020 = vmatmul.mubr.msk.bf16.gmra.mxu1 %vm1171_vm2, %v2054_v12  ;;  %1806 = vmatprep.mubr.f32.mxu0 %v1735_v26  ;;  %v989_v12 = vpop.permute.xlu0 %988 }
 0x260   : > { %1877 = vmatprep.mubr.f32.mxu1 %v1735_v26 }
 0x2a6   : > { %v2494_v13 = vpop.f32.mrf.mxu0 }
 0x2a7   : > { %2830 = vst [vmem:[#allocation2_spill] sm:$0xff] %v2494_v13  ;;  %v2496_v18 = vpop.f32.mrf.mxu1 }
 0x2a8   : > { %2831 = vst [vmem:[#allocation3_spill] sm:$0xff] %v2496_v18  ;;  %v2498_v21 = vpop.f32.mrf.mxu0 }
 0x2a9   : > { %2832 = vst [vmem:[#allocation4_spill] sm:$0xff] %v2498_v21  ;;  %v2500_v22 = vpop.f32.mrf.mxu1 }
 0x2aa   : > { %2833 = vst [vmem:[#allocation5_spill] sm:$0xff] %v2500_v22  ;;  %v2502_v15 = vpop.f32.mrf.mxu0  ;;  %v2591_v22 = vpop.permute.xlu1 %983 }
 0x2ab   : > { %2834 = vst [vmem:[#allocation6_spill] sm:$0xff] %v2502_v15  ;;  %v2504_v17 = vpop.f32.mrf.mxu1 }
 0x2ac   : > { %2835 = vst [vmem:[#allocation7_spill] sm:$0xff] %v2504_v17  ;;  %v2506_v2 = vpop.f32.mrf.mxu0 }
 0x2ad   : > { %2836 = vst [vmem:[#allocation8_spill] sm:$0xff] %v2506_v2  ;;  %v2508_v63 = vpop.f32.mrf.mxu1 }
 0x2ae   : > { %2837 = vst [vmem:[#allocation9_spill] sm:$0xff] %v2508_v63  ;;  %v2510_v23 = vpop.f32.mrf.mxu0 }
 0x2af   : > { %2838 = vst [vmem:[#allocation10_spill] sm:$0xff] %v2510_v23  ;;  %v2512_v25 = vpop.f32.mrf.mxu1  ;;  %v2593_v23 = vpop.permute.xlu0 %978 }
 0x2b0   : > { %2839 = vst [vmem:[#allocation11_spill] sm:$0xff] %v2512_v25  ;;  %v2514_v10 = vpop.f32.mrf.mxu0 }
 0x2b1   : > { %2840 = vst [vmem:[#allocation12_spill] sm:$0xff] %v2514_v10  ;;  %v2516_v19 = vpop.f32.mrf.mxu1 }
 0x2b2   : > { %2841 = vst [vmem:[#allocation13_spill] sm:$0xff] %v2516_v19  ;;  %v2518_v1 = vpop.f32.mrf.mxu0 }
 0x2b3   : > { %2842 = vst [vmem:[#allocation14_spill] sm:$0xff] %v2518_v1  ;;  %v2520_v20 = vpop.f32.mrf.mxu1 }
 0x2b4   : > { %2843 = vst [vmem:[#allocation15_spill] sm:$0xff] %v2520_v20  ;;  %v2522_v29 = vpop.f32.mrf.mxu0 }
 0x2b5   : > { %2844 = vst [vmem:[#allocation16_spill] sm:$0xff] %v2522_v29  ;;  %v2524_v34 = vpop.f32.mrf.mxu1 }
 0x2b6   : > { %2845 = vst [vmem:[#allocation17_spill] sm:$0xff] %v2524_v34  ;;  %v2526_v39 = vpop.f32.mrf.mxu0 }
 0x2b7   : > { %2846 = vst [vmem:[#allocation18_spill] sm:$0xff] %v2526_v39  ;;  %v2528_v8 = vpop.f32.mrf.mxu1 }
 0x2b8   : > { %2847 = vst [vmem:[#allocation19_spill] sm:$0xff] %v2528_v8  ;;  %v2530_v14 = vpop.f32.mrf.mxu0 }
 0x2b9   : > { %2848 = vst [vmem:[#allocation20_spill] sm:$0xff] %v2530_v14  ;;  %v2532_v41 = vpop.f32.mrf.mxu1 }
 0x2ba   : > { %2849 = vst [vmem:[#allocation21_spill] sm:$0xff] %v2532_v41  ;;  %v2534_v37 = vpop.f32.mrf.mxu0 }
 0x2bb   : > { %2850 = vst [vmem:[#allocation22_spill] sm:$0xff] %v2534_v37  ;;  %v2536_v42 = vpop.f32.mrf.mxu1 }
 0x2bc   : > { %2851 = vst [vmem:[#allocation23_spill] sm:$0xff] %v2536_v42  ;;  %v2538_v3 = vpop.f32.mrf.mxu0  ;;  %v2599_v42 = vpop.permute.xlu1 %973 }
 0x2bd   : > { %v2540_v38 = vpop.f32.mrf.mxu1 }
 0x2be   : > { %2852 = vst [vmem:[#allocation24_spill] sm:$0xff] %v2540_v38  ;;  %v2542_v40 = vpop.f32.mrf.mxu0 }
 0x2bf   : > { %v2544_v43 = vpop.f32.mrf.mxu1 }
 0x2c0   : > { %v2546_v44 = vpop.f32.mrf.mxu0 }
 0x2c1   : > { %v2548_v60 = vpop.f32.mrf.mxu1 }
 0x2c2   : > { %v2550_v45 = vpop.f32.mrf.mxu0 }
 0x2c3   : > { %v2552_v4 = vpop.f32.mrf.mxu1 }
 0x2c4   : > { %v2554_v16 = vpop.f32.mrf.mxu0 }
 0x2c5   : > { %v2556_v32 = vpop.f32.mrf.mxu1 }
 0x2c6   : > { %v2558_v46 = vpop.f32.mrf.mxu0 }
 0x2c7   : > { %v2560_v47 = vpop.f32.mrf.mxu1 }
 0x2c8   : > { %v2562_v61 = vpop.f32.mrf.mxu0 }
 0x2c9   : > { %v2567_v33 = vpop.f32.mrf.mxu1 }
 0x2ca   : > { %v2569_v30 = vpop.f32.mrf.mxu0 }
 0x2cb   : > { %v2571_v35 = vpop.f32.mrf.mxu1 }
 0x2cc   : > { %v2573_v36 = vpop.f32.mrf.mxu0 }
 0x2cd   : > { %v2575_v48 = vpop.f32.mrf.mxu1 }
 0x2ce   : > { %v2577_v56 = vpop.f32.mrf.mxu0 }
 0x2cf   : > { %v2579_v49 = vpop.f32.mrf.mxu1 }
 0x2d0   : > { %v2581_v31 = vpop.f32.mrf.mxu0 }
 0x2d1   : > { %v2583_v50 = vpop.f32.mrf.mxu1 }
 0x2d2   : > { %v2585_v51 = vpop.f32.mrf.mxu0 }
 0x2d3   : > { %v2587_v57 = vpop.f32.mrf.mxu1 }
 0x2d4   : > { %v1310_v27 = vpop.f32.mrf.mxu0 }
 0x2d5   : > { %v2589_v28 = vpop.f32.mrf.mxu1 }
 0x2d6   : > { %v1314_v53 = vpop.f32.mrf.mxu0 }
 0x2d7   : > { %v1507_v54 = vpop.f32.mrf.mxu1 }
 0x2d8   : > { %v1316_v55 = vpop.f32.mrf.mxu0 }
 0x2d9   : > { %v1509_v58 = vpop.f32.mrf.mxu1  ;;  %v1317_v38 = vadd.f32 %v1316_v55, %v994_v5 }
 0x2da   : > { %v1318_v62 = vpop.f32.mrf.mxu0 }
 0x2db   : > { %v1511_v0 = vpop.f32.mrf.mxu1 }
 0x2dc   : > { %v1320_v6 = vpop.f32.mrf.mxu0  ;;  %v1512_v37 = vadd.f32 %v1511_v0, %v999_v59 }
 0x2dd   : > { %v1513_v7 = vpop.f32.mrf.mxu1  ;;  %v1321_v8 = vadd.f32 %v1320_v6, %v999_v59 }
 0x2de   : > { %v1324_v9 = vpop.f32.mrf.mxu0  ;;  %v1514_v14 = vadd.f32 %v1513_v7, %v999_v59 }
 0x2df   : > { %v1517_v11 = vpop.f32.mrf.mxu1  ;;  %v1325_v20 = vadd.f32 %v1324_v9, %v1004_v52 }
 0x2e0   : > { %v1326_v26 = vpop.f32.mrf.mxu0  ;;  %v1518_v29 = vadd.f32 %v1517_v11, %v1004_v52 }
 0x2e1   : > { %v1519_v18 = vpop.f32.mrf.mxu1  ;;  %v1327_v15 = vadd.f32 %v1326_v26, %v1004_v52 }
 0x2e2   : > { %v1328_v13 = vpop.f32.mrf.mxu0  ;;  %v1520_v10 = vadd.f32 %v1519_v18, %v1004_v52  ;;  %v1510_v52 = vadd.f32 %v1509_v58, %v994_v5  ;;  %v1664_v7 = vmax.f32 %v1518_v29, 0.0  ;;  %v1502_v29 = vadd.f32 %v2587_v57, %v989_v12 }
 0x2e3   : > { %v1521_v17 = vpop.f32.mrf.mxu1  ;;  %v1329_v21 = vadd.f32 %v1328_v13, %v1009_v24  ;;  %v1319_v13 = vadd.f32 %v1318_v62, %v999_v59  ;;  %v1663_v9 = vmax.f32 %v1327_v15, 0.0  ;;  %v1311_v62 = vadd.f32 %v1310_v27, %v989_v12  ;;  %v2609_v15 = vpop.permute.xlu0 %968 }
 0x2e4   : > { %v1330_v63 = vpop.f32.mrf.mxu0  ;;  %v1522_v25 = vadd.f32 %v1521_v17, %v1009_v24  ;;  %v1665_v6 = vmax.f32 %v1520_v10, 0.0  ;;  %v1661_v10 = vmax.f32 %v1514_v14, 0.0  ;;  %v1655_v27 = vmax.f32 %v1317_v38, 0.0 }
 0x2e5   : > { %v1331_v2 = vadd.f32 %v1330_v63, %v1009_v24  ;;  %v1523_v19 = vpop.f32.mrf.mxu1  ;;  %v1666_v26 = vmax.f32 %v1329_v21, 0.0  ;;  %v1508_v21 = vadd.f32 %v1507_v54, %v994_v5  ;;  %v1660_v54 = vmax.f32 %v1512_v37, 0.0 }
 0x2e6   : > { %v1524_v34 = vadd.f32 %v1523_v19, %v1009_v24  ;;  %v2595_v1 = vpop.f32.mrf.mxu0  ;;  %v1668_v18 = vmax.f32 %v1522_v25, 0.0  ;;  %v1315_v24 = vadd.f32 %v1314_v53, %v994_v5  ;;  %v1309_v25 = vadd.f32 %v2585_v51, %v989_v12  ;;  %v2620_v51 = vpop.permute.xlu1 %963 }
 0x2e7   : > { %2853 = vst [vmem:[#allocation25_spill] sm:$0xff] %v2595_v1  ;;  %v1667_v41 = vmax.f32 %v1331_v2, 0.0  ;;  %v2597_v39 = vpop.f32.mrf.mxu1  ;;  %v1662_v2 = vmax.f32 %v1325_v20, 0.0  ;;  %v1658_v20 = vmax.f32 %v1319_v13, 0.0  ;;  %v1305_v14 = vadd.f32 %v2577_v56, %v2591_v22 }
 0x2e8   : > { %2854 = vst [vmem:[#allocation26_spill] sm:$0xff] %v2597_v39  ;;  %v1669_v17 = vmax.f32 %v1524_v34, 0.0  ;;  %v2601_v63 = vpop.f32.mrf.mxu0  ;;  %v1659_v34 = vmax.f32 %v1321_v8, 0.0  ;;  %v1307_v8 = vadd.f32 %v2581_v31, %v2591_v22  ;;  %v1654_v58 = vmax.f32 %v1315_v24, 0.0 }
 0x2e9   : > { %2855 = vst [vmem:[#allocation27_spill] sm:$0xff] %v2601_v63  ;;  %v2603_v19 = vpop.f32.mrf.mxu1  ;;  %1742 = vmatprep.subr.mxu0 %v1667_v41  ;;  %v1504_v41 = vadd.f32 %v2589_v28, %v989_v12  ;;  %v1500_v28 = vadd.f32 %v2583_v50, %v2591_v22  ;;  %v1657_v59 = vmax.f32 %v1510_v52, 0.0  ;;  %v1301_v37 = vadd.f32 %v2573_v36, %v2593_v23 }
 0x2ea   : > { %2856 = vst [vmem:[#allocation28_spill] sm:$0xff] %v2603_v19  ;;  %1813 = vmatprep.subr.mxu1 %v1669_v17  ;;  %v2605_v11 = vpop.f32.mrf.mxu0  ;;  %1743 = vmatpush1.msra.mxu0 %v1666_v26  ;;  %v1498_v38 = vadd.f32 %v2579_v49, %v2591_v22  ;;  %v1651_v57 = vmax.f32 %v1311_v62, 0.0  ;;  %v1656_v0 = vmax.f32 %v1508_v21, 0.0  ;;  %v1299_v56 = vadd.f32 %v2569_v30, %v2593_v23  ;;  %v959_v30 = vpop.permute.xlu0 %958 }
 0x2eb   : > { %2857 = vst [vmem:[#allocation29_spill] sm:$0xff] %v2605_v11  ;;  %v2607_v39 = vpop.f32.mrf.mxu1  ;;  %1814 = vmatpush1.msra.mxu1 %v1668_v18  ;;  %1744 = vmatprep.subr.mxu0 %v1663_v9  ;;  %v1494_v50 = vadd.f32 %v2575_v48, %v2593_v23  ;;  %v1650_v12 = vmax.f32 %v1309_v25, 0.0  ;;  %v1653_v13 = vmax.f32 %v1504_v41, 0.0  ;;  %v1297_v22 = vadd.f32 %v2562_v61, %v2599_v42 }
 0x2ec   : > { %2858 = vst [vmem:[#allocation30_spill] sm:$0xff] %v2607_v39  ;;  %1815 = vmatprep.subr.mxu1 %v1665_v6  ;;  %v2613_v53 = vpop.f32.mrf.mxu0  ;;  %1745 = vmatpush1.msra.mxu0 %v1662_v2  ;;  %v1492_v36 = vadd.f32 %v2571_v35, %v2593_v23  ;;  %v1647_v49 = vmax.f32 %v1307_v8, 0.0  ;;  %v1652_v17 = vmax.f32 %v1502_v29, 0.0  ;;  %v1295_v48 = vadd.f32 %v2558_v46, %v2599_v42  ;;  %v954_v46 = vpop.permute.xlu1 %953 }
 0x2ed   : > { %2859 = vst [vmem:[#allocation31_spill] sm:$0xff] %v2613_v53  ;;  %v2618_v55 = vpop.f32.mrf.mxu1  ;;  %1816 = vmatpush1.msra.mxu1 %v1664_v7  ;;  %1746 = vmatprep.subr.mxu0 %v1659_v34  ;;  %v1490_v18 = vadd.f32 %v2567_v33, %v2599_v42  ;;  %v1646_v24 = vmax.f32 %v1305_v14, 0.0  ;;  %v1649_v52 = vmax.f32 %v1500_v28, 0.0  ;;  %v1291_v23 = vadd.f32 %v2554_v16, %v2609_v15  ;;  %v2871_v14 = vld [vmem:[#allocation22_spill] sm:$0xff]  ;;  %v2872_v28 = vld [vmem:[#allocation24_spill] sm:$0xff] }
 0x2ee   : > { %2860 = vst [vmem:[#allocation32_spill] sm:$0xff] %v2618_v55  ;;  %1817 = vmatprep.subr.mxu1 %v1661_v10  ;;  %v2626_v31 = vpop.f32.mrf.mxu0  ;;  %1747 = vmatpush1.msra.mxu0 %v1658_v20  ;;  %v1488_v35 = vadd.f32 %v2560_v47, %v2599_v42  ;;  %v1643_v2 = vmax.f32 %v1301_v37, 0.0  ;;  %v1648_v6 = vmax.f32 %v1498_v38, 0.0  ;;  %v1289_v33 = vadd.f32 %v2550_v45, %v2609_v15 }
 0x2ef   : > { %2861 = vst [vmem:[#allocation33_spill] sm:$0xff] %v2626_v31  ;;  %v2632_v5 = vpop.f32.mrf.mxu1  ;;  %1818 = vmatpush1.msra.mxu1 %v1660_v54  ;;  %1748 = vmatprep.subr.mxu0 %v1655_v27  ;;  %v1484_v21 = vadd.f32 %v2556_v32, %v2609_v15  ;;  %v1642_v34 = vmax.f32 %v1299_v56, 0.0  ;;  %v1645_v7 = vmax.f32 %v1494_v50, 0.0  ;;  %v1287_v42 = vadd.f32 %v2546_v44, %v2620_v51 }
 0x2f0   : > { %2862 = vst [vmem:[#allocation34_spill] sm:$0xff] %v2632_v5  ;;  %1819 = vmatprep.subr.mxu1 %v1657_v59  ;;  %v2638_v26 = vpop.f32.mrf.mxu0  ;;  %1749 = vmatpush1.msra.mxu0 %v1654_v58  ;;  %v1482_v47 = vadd.f32 %v2552_v4, %v2609_v15  ;;  %v1639_v25 = vmax.f32 %v1297_v22, 0.0  ;;  %v1644_v41 = vmax.f32 %v1492_v36, 0.0  ;;  %v1285_v45 = vadd.f32 %v2542_v40, %v2620_v51  ;;  %v949_v40 = vpop.permute.xlu0 %948  ;;  %v2878_v36 = vld [vmem:[#allocation21_spill] sm:$0xff] }
 0x2f1   : > { %2863 = vst [vmem:[#allocation35_spill] sm:$0xff] %v2638_v26  ;;  %v2644_v9 = vpop.f32.mrf.mxu1  ;;  %1820 = vmatpush1.msra.mxu1 %v1656_v0  ;;  %1750 = vmatprep.subr.mxu0 %v1651_v57  ;;  %v1480_v32 = vadd.f32 %v2548_v60, %v2620_v51  ;;  %v1638_v10 = vmax.f32 %v1295_v48, 0.0  ;;  %v1641_v8 = vmax.f32 %v1490_v18, 0.0  ;;  %v1281_v44 = vadd.f32 %v2538_v3, %v959_v30  ;;  %v2874_v3 = vld [vmem:[#allocation20_spill] sm:$0xff] }
 0x2f2   : > { %2864 = vst [vmem:[#allocation36_spill] sm:$0xff] %v2644_v9  ;;  %1821 = vmatprep.subr.mxu1 %v1653_v13  ;;  %v2650_v61 = vpop.f32.mrf.mxu0  ;;  %1751 = vmatpush1.msra.mxu0 %v1650_v12  ;;  %v1478_v4 = vadd.f32 %v2544_v43, %v2620_v51  ;;  %v1635_v15 = vmax.f32 %v1291_v23, 0.0  ;;  %v1640_v27 = vmax.f32 %v1488_v35, 0.0  ;;  %v1279_v60 = vadd.f32 %v2871_v14, %v959_v30  ;;  %v2875_v43 = vld [vmem:[#allocation23_spill] sm:$0xff]  ;;  %v944_v12 = vpop.permute.xlu1 %943  ;;  %v2877_v13 = vld [vmem:[#allocation18_spill] sm:$0xff]  ;;  %v2890_v14 = vld [vmem:[#allocation13_spill] sm:$0xff] }
 0x2f3   : > { %2865 = vst [vmem:[#allocation37_spill] sm:$0xff] %v2650_v61  ;;  %v2656_v62 = vpop.f32.mrf.mxu1  ;;  %1822 = vmatpush1.msra.mxu1 %v1652_v17  ;;  %1752 = vmatprep.subr.mxu0 %v1647_v49  ;;  %v1474_v58 = vadd.f32 %v2872_v28, %v959_v30  ;;  %v1634_v59 = vmax.f32 %v1289_v33, 0.0  ;;  %v1637_v37 = vmax.f32 %v1484_v21, 0.0  ;;  %v1277_v57 = vadd.f32 %v2874_v3, %v954_v46  ;;  %v2883_v33 = vld [vmem:[#allocation14_spill] sm:$0xff] }
 0x2f4   : > { %2866 = vst [vmem:[#allocation38_spill] sm:$0xff] %v2656_v62  ;;  %1823 = vmatprep.subr.mxu1 %v1649_v52  ;;  %v2662_v16 = vpop.f32.mrf.mxu0  ;;  %1753 = vmatpush1.msra.mxu0 %v1646_v24  ;;  %v1472_v51 = vadd.f32 %v2875_v43, %v959_v30  ;;  %v1631_v0 = vmax.f32 %v1287_v42, 0.0  ;;  %v1636_v56 = vmax.f32 %v1482_v47, 0.0  ;;  %v1275_v22 = vadd.f32 %v2877_v13, %v954_v46  ;;  %v2880_v24 = vld [vmem:[#allocation16_spill] sm:$0xff]  ;;  %v2881_v30 = vld [vmem:[#allocation19_spill] sm:$0xff]  ;;  %v2894_v13 = vld [vmem:[#allocation6_spill] sm:$0xff] }
 0x2f5   : > { %2867 = vst [vmem:[#allocation39_spill] sm:$0xff] %v2662_v16  ;;  %v2668_v20 = vpop.f32.mrf.mxu1  ;;  %1824 = vmatpush1.msra.mxu1 %v1648_v6  ;;  %1754 = vmatprep.subr.mxu0 %v1643_v2  ;;  %v1470_v49 = vadd.f32 %v2878_v36, %v954_v46  ;;  %v1630_v17 = vmax.f32 %v1285_v45, 0.0  ;;  %v1633_v48 = vmax.f32 %v1480_v32, 0.0  ;;  %v1271_v52 = vadd.f32 %v2880_v24, %v949_v40  ;;  %v2887_v32 = vld [vmem:[#allocation15_spill] sm:$0xff] }
 0x2f6   : > { %2868 = vst [vmem:[#allocation40_spill] sm:$0xff] %v2668_v20  ;;  %1825 = vmatprep.subr.mxu1 %v1645_v7  ;;  %v2674_v29 = vpop.f32.mrf.mxu0  ;;  %1755 = vmatpush1.msra.mxu0 %v1642_v34  ;;  %v1468_v23 = vadd.f32 %v2881_v30, %v954_v46  ;;  %v1627_v35 = vmax.f32 %v1281_v44, 0.0  ;;  %v1632_v2 = vmax.f32 %v1478_v4, 0.0  ;;  %v1269_v21 = vadd.f32 %v2883_v33, %v949_v40  ;;  %v2884_v34 = vld [vmem:[#allocation17_spill] sm:$0xff]  ;;  %v939_v4 = vpop.permute.xlu0 %938  ;;  %v2896_v30 = vld [vmem:[#allocation4_spill] sm:$0xff] }
 0x2f7   : > { %2869 = vst [vmem:[#allocation41_spill] sm:$0xff] %v2674_v29  ;;  %v2679_v54 = vpop.f32.mrf.mxu1  ;;  %1826 = vmatpush1.msra.mxu1 %v1644_v41  ;;  %1756 = vmatprep.subr.mxu0 %v1639_v25  ;;  %v1464_v7 = vadd.f32 %v2884_v34, %v949_v40  ;;  %v1626_v42 = vmax.f32 %v1279_v60, 0.0  ;;  %v1629_v47 = vmax.f32 %v1474_v58, 0.0  ;;  %v2886_v41 = vld [vmem:[#allocation12_spill] sm:$0xff]  ;;  %v1462_v46 = vadd.f32 %v2887_v32, %v949_v40  ;;  %v2892_v40 = vld [vmem:[#allocation11_spill] sm:$0xff]  ;;  %v2898_v34 = vld [vmem:[#allocation2_spill] sm:$0xff] }
 0x2f8   : > { %2870 = vst [vmem:[#allocation42_spill] sm:$0xff] %v2679_v54  ;;  %1827 = vmatprep.subr.mxu1 %v1641_v8  ;;  %v2683_v38 = vpop.f32.mrf.mxu0  ;;  %1757 = vmatpush1.msra.mxu0 %v1638_v10  ;;  %v1267_v45 = vadd.f32 %v2886_v41, %v944_v12  ;;  %v1623_v10 = vmax.f32 %v1277_v57, 0.0  ;;  %v1628_v8 = vmax.f32 %v1472_v51, 0.0  ;;  %v1460_v60 = vadd.f32 %v2890_v14, %v944_v12 }
 0x2f9   : > { %2873 = vst [vmem:[#allocation22_spill] sm:$0xff] %v2683_v38  ;;  %v2687_v50 = vpop.f32.mrf.mxu1  ;;  %1828 = vmatpush1.msra.mxu1 %v1640_v27  ;;  %1758 = vmatprep.subr.mxu0 %v1635_v15  ;;  %v2889_v15 = vld [vmem:[#allocation10_spill] sm:$0xff]  ;;  %v1622_v28 = vmax.f32 %v1275_v22, 0.0  ;;  %v1625_v58 = vmax.f32 %v1470_v49, 0.0  ;;  %v1458_v57 = vadd.f32 %v2892_v40, %v944_v12  ;;  %v1619_v43 = vmax.f32 %v1271_v52, 0.0 }
 0x2fa   : > { %2876 = vst [vmem:[#allocation24_spill] sm:$0xff] %v2687_v50  ;;  %1829 = vmatprep.subr.mxu1 %v1637_v37  ;;  %v2691_v18 = vpop.f32.mrf.mxu0  ;;  %1759 = vmatpush1.msra.mxu0 %v1634_v59  ;;  %v1265_v27 = vadd.f32 %v2889_v15, %v944_v12  ;;  %v2891_v37 = vld [vmem:[#allocation8_spill] sm:$0xff]  ;;  %v1624_v51 = vmax.f32 %v1468_v23, 0.0  ;;  %v1259_v36 = vadd.f32 %v2894_v13, %v939_v4  ;;  %v1618_v49 = vmax.f32 %v1269_v21, 0.0  ;;  %v2897_v12 = vld [vmem:[#allocation7_spill] sm:$0xff] }
 0x2fb   : > { %2879 = vst [vmem:[#allocation20_spill] sm:$0xff] %v2691_v18  ;;  %v2695_v6 = vpop.f32.mrf.mxu1  ;;  %1830 = vmatpush1.msra.mxu1 %v1636_v56  ;;  %1760 = vmatprep.subr.mxu0 %v1631_v0  ;;  %v1261_v3 = vadd.f32 %v2891_v37, %v939_v4  ;;  %v934_v56 = vpop.permute.xlu1 %933  ;;  %v1452_v52 = vadd.f32 %v2897_v12, %v939_v4  ;;  %v1615_v23 = vmax.f32 %v1267_v45, 0.0 }
 0x2fc   : > { %2882 = vst [vmem:[#allocation23_spill] sm:$0xff] %v2695_v6  ;;  %1831 = vmatprep.subr.mxu1 %v1633_v48  ;;  %v2699_v25 = vpop.f32.mrf.mxu0  ;;  %1761 = vmatpush1.msra.mxu0 %v1630_v17  ;;  %v2895_v17 = vld [vmem:[#allocation9_spill] sm:$0xff]  ;;  %v1621_v48 = vmax.f32 %v1464_v7, 0.0  ;;  %v1614_v21 = vmax.f32 %v1265_v27, 0.0  ;;  %v1617_v7 = vmax.f32 %v1460_v60, 0.0 }
 0x2fd   : > { %2885 = vst [vmem:[#allocation18_spill] sm:$0xff] %v2699_v25  ;;  %v2703_v44 = vpop.f32.mrf.mxu1  ;;  %1832 = vmatpush1.msra.mxu1 %v1632_v2  ;;  %1762 = vmatprep.subr.mxu0 %v1627_v35  ;;  %v1454_v22 = vadd.f32 %v2895_v17, %v939_v4  ;;  %v1257_v35 = vadd.f32 %v2896_v30, %v934_v56  ;;  %v1620_v2 = vmax.f32 %v1462_v46, 0.0  ;;  %v1611_v15 = vmax.f32 %v1261_v3, 0.0 }
 0x2fe   : > { %2888 = vst [vmem:[#allocation21_spill] sm:$0xff] %v2703_v44  ;;  %1833 = vmatprep.subr.mxu1 %v1629_v47  ;;  %v2707_v59 = vpop.f32.mrf.mxu0  ;;  %1763 = vmatpush1.msra.mxu0 %v1626_v42  ;;  %v1255_v42 = vadd.f32 %v2898_v34, %v934_v56  ;;  %v2899_v47 = vld [vmem:[#allocation5_spill] sm:$0xff]  ;;  %v1616_v4 = vmax.f32 %v1458_v57, 0.0  ;;  %v1610_v46 = vmax.f32 %v1259_v36, 0.0  ;;  %v1612_v60 = vmax.f32 %v1452_v52, 0.0 }
 0x2ff   : > { %v2711_v0 = vpop.f32.mrf.mxu1  ;;  %1834 = vmatpush1.msra.mxu1 %v1628_v8  ;;  %1764 = vmatprep.subr.mxu0 %v1623_v10  ;;  %v1450_v41 = vadd.f32 %v2899_v47, %v934_v56  ;;  %v2900_v10 = vld [vmem:[#allocation3_spill] sm:$0xff]  ;;  %v1613_v14 = vmax.f32 %v1454_v22, 0.0  ;;  %v1607_v27 = vmax.f32 %v1257_v35, 0.0 }
 0x300   : > { %2893 = vst [vmem:[#allocation16_spill] sm:$0xff] %v2711_v0  ;;  %1835 = vmatprep.subr.mxu1 %v1625_v58  ;;  %v2715_v24 = vpop.f32.mrf.mxu0  ;;  %1765 = vmatpush1.msra.mxu0 %v1622_v28  ;;  %v1448_v8 = vadd.f32 %v2900_v10, %v934_v56  ;;  %v1606_v37 = vmax.f32 %v1255_v42, 0.0  ;;  %v1084_v42 = vpop.permute.xlu1 %1083 }
 0x301   : > { %v2719_v33 = vpop.f32.mrf.mxu1  ;;  %1836 = vmatpush1.msra.mxu1 %v1624_v51  ;;  %1766 = vmatprep.subr.mxu0 %v1619_v43  ;;  %v1609_v40 = vmax.f32 %v1450_v41, 0.0 }
 0x302   : > { %1837 = vmatprep.subr.mxu1 %v1621_v48  ;;  %v2723_v32 = vpop.f32.mrf.mxu0  ;;  %1767 = vmatpush1.msra.mxu0 %v1618_v49  ;;  %v1608_v57 = vmax.f32 %v1448_v8, 0.0 }
 0x303   : > { %v2726_v45 = vpop.f32.mrf.mxu1  ;;  %1838 = vmatpush1.msra.mxu1 %v1620_v2  ;;  %1768 = vmatprep.subr.mxu0 %v1615_v23  ;;  %v1089_v23 = vpop.permute.xlu0 %1088 }
 0x304   : > { %1839 = vmatprep.subr.mxu1 %v1617_v7  ;;  %v2728_v28 = vpop.f32.mrf.mxu0  ;;  %1769 = vmatpush1.msra.mxu0 %v1614_v21 }
 0x305   : > { %v2730_v58 = vpop.f32.mrf.mxu1  ;;  %1840 = vmatpush1.msra.mxu1 %v1616_v4  ;;  %1770 = vmatprep.subr.mxu0 %v1611_v15  ;;  %v1074_v4 = vpop.permute.xlu1 %1073 }
 0x306   : > { %1841 = vmatprep.subr.mxu1 %v1613_v14  ;;  %v2732_v3 = vpop.f32.mrf.mxu0  ;;  %1771 = vmatpush1.msra.mxu0 %v1610_v46 }
 0x307   : > { %v2734_v43 = vpop.f32.mrf.mxu1  ;;  %1842 = vmatpush1.msra.mxu1 %v1612_v60  ;;  %1772 = vmatprep.subr.mxu0 %v1607_v27  ;;  %v1079_v10 = vpop.permute.xlu0 %1078 }
 0x308   : > { %1843 = vmatprep.subr.mxu1 %v1609_v40  ;;  %v2736_v51 = vpop.f32.mrf.mxu0  ;;  %1773 = vmatpush1.msra.mxu0 %v1606_v37 }
 0x309   : > { %v2738_v56 = vpop.f32.mrf.mxu1  ;;  %1844 = vmatpush1.msra.mxu1 %v1608_v57  ;;  %v1064_v19 = vpop.permute.xlu1 %1063 }
 0x30a   : > { %v2740_v13 = vpop.f32.mrf.mxu0 }
 0x30b   : > { %v2742_v36 = vpop.f32.mrf.mxu1  ;;  %v1069_v37 = vpop.permute.xlu0 %1068 }
 0x30c   : > { %v2744_v17 = vpop.f32.mrf.mxu0 }
 0x30d   : > { %v2746_v22 = vpop.f32.mrf.mxu1  ;;  %v2758_v50 = vpop.permute.xlu1 %1053 }
 0x30e   : > { %v2748_v49 = vpop.f32.mrf.mxu0 }
 0x30f   : > { %v2750_v48 = vpop.f32.mrf.mxu1  ;;  %v1059_v31 = vpop.permute.xlu0 %1058 }
 0x310   : > { %v2752_v30 = vpop.f32.mrf.mxu0 }
 0x311   : > { %v2754_v35 = vpop.f32.mrf.mxu1 }
 0x312   : > { %v1388_v12 = vpop.f32.mrf.mxu0 }
 0x313   : > { %v2756_v52 = vpop.f32.mrf.mxu1 }
 0x314   : > { %v1390_v2 = vpop.f32.mrf.mxu0 }
 0x315   : > { %v1583_v34 = vpop.f32.mrf.mxu1 }
 0x316   : > { %v1394_v47 = vpop.f32.mrf.mxu0 }
 0x317   : > { %v1587_v41 = vpop.f32.mrf.mxu1 }
 0x318   : > { %v1396_v21 = vpop.f32.mrf.mxu0 }
 0x319   : > { %v1589_v7 = vpop.f32.mrf.mxu1  ;;  %v1397_v18 = vadd.f32 %v1396_v21, %v1074_v4 }
 0x31a   : > { %v1398_v8 = vpop.f32.mrf.mxu0 }
 0x31b   : > { %v1591_v15 = vpop.f32.mrf.mxu1  ;;  %v1399_v29 = vadd.f32 %v1398_v8, %v1079_v10  ;;  %v1049_v8 = vpop.permute.xlu0 %1048 }
 0x31c   : > { %v1400_v46 = vpop.f32.mrf.mxu0 }
 0x31d   : > { %v1593_v14 = vpop.f32.mrf.mxu1  ;;  %v1401_v61 = vadd.f32 %v1400_v46, %v1079_v10  ;;  %v1722_v21 = vmax.f32 %v1399_v29, 0.0  ;;  %v1381_v29 = vadd.f32 %v2744_v17, %v1059_v31 }
 0x31e   : > { %v1404_v27 = vpop.f32.mrf.mxu0  ;;  %v1594_v6 = vadd.f32 %v1593_v14, %v1079_v10 }
 0x31f   : > { %v1597_v60 = vpop.f32.mrf.mxu1  ;;  %v1405_v62 = vadd.f32 %v1404_v27, %v1084_v42 }
 0x320   : > { %v1406_v40 = vpop.f32.mrf.mxu0  ;;  %v1598_v54 = vadd.f32 %v1597_v60, %v1084_v42 }
 0x321   : > { %v1599_v57 = vpop.f32.mrf.mxu1  ;;  %v1407_v11 = vadd.f32 %v1406_v40, %v1084_v42  ;;  %v1726_v25 = vmax.f32 %v1405_v62, 0.0 }
 0x322   : > { %v1408_v1 = vpop.f32.mrf.mxu0  ;;  %v1600_v26 = vadd.f32 %v1599_v57, %v1084_v42  ;;  %v1728_v42 = vmax.f32 %v1598_v54, 0.0  ;;  %v1580_v54 = vadd.f32 %v2754_v35, %v1064_v19  ;;  %v1377_v35 = vadd.f32 %v2736_v51, %v2758_v50  ;;  %v2902_v57 = vld [vmem:[#allocation16_spill] sm:$0xff] }
 0x323   : > { %v1601_v39 = vpop.f32.mrf.mxu1  ;;  %v1409_v63 = vadd.f32 %v1408_v1, %v1089_v23  ;;  %v1592_v1 = vadd.f32 %v1591_v15, %v1079_v10  ;;  %v1727_v0 = vmax.f32 %v1407_v11, 0.0  ;;  %v1725_v10 = vmax.f32 %v1594_v6, 0.0 }
 0x324   : > { %v1410_v55 = vpop.f32.mrf.mxu0  ;;  %v1602_v5 = vadd.f32 %v1601_v39, %v1089_v23  ;;  %v1395_v39 = vadd.f32 %v1394_v47, %v1074_v4  ;;  %v1729_v27 = vmax.f32 %v1600_v26, 0.0  ;;  %v1387_v11 = vadd.f32 %v2752_v30, %v1064_v19 }
 0x325   : > { %v1411_v53 = vadd.f32 %v1410_v55, %v1089_v23  ;;  %v1603_v9 = vpop.f32.mrf.mxu1  ;;  %v1730_v38 = vmax.f32 %v1409_v63, 0.0  ;;  %v1590_v55 = vadd.f32 %v1589_v7, %v1074_v4  ;;  %v1389_v63 = vadd.f32 %v1388_v12, %v1069_v37 }
 0x326   : > { %v1604_v20 = vadd.f32 %v1603_v9, %v1089_v23  ;;  %v1732_v40 = vmax.f32 %v1602_v5, 0.0  ;;  %v1391_v9 = vadd.f32 %v1390_v2, %v1069_v37  ;;  %v1588_v23 = vadd.f32 %v1587_v41, %v1074_v4 }
 0x327   : > { %v1731_v16 = vmax.f32 %v1411_v53, 0.0  ;;  %v1723_v53 = vmax.f32 %v1401_v61, 0.0  ;;  %v1582_v5 = vadd.f32 %v2756_v52, %v1069_v37  ;;  %v1719_v26 = vmax.f32 %v1397_v18, 0.0 }
 0x328   : > { %v1733_v44 = vmax.f32 %v1604_v20, 0.0  ;;  %v1584_v20 = vadd.f32 %v1583_v34, %v1069_v37  ;;  %v1724_v62 = vmax.f32 %v1592_v1, 0.0  ;;  %v1385_v61 = vadd.f32 %v2748_v49, %v1064_v19 }
 0x329   : > { %1774 = vmatprep.subr.mxu0 %v1731_v16  ;;  %v1044_v16 = vpop.permute.xlu1 %1043  ;;  %v1578_v6 = vadd.f32 %v2750_v48, %v1064_v19  ;;  %v1379_v18 = vadd.f32 %v2740_v13, %v1059_v31  ;;  %v1574_v30 = vadd.f32 %v2746_v22, %v1059_v31  ;;  %v1714_v12 = vmax.f32 %v1389_v63, 0.0  ;;  %v1039_v19 = vpop.permute.xlu0 %1038 }
 0x32a   : > { %1845 = vmatprep.subr.mxu1 %v1733_v44  ;;  %1775 = vmatpush2.msra.mxu0 %v1730_v38  ;;  %v1718_v38 = vmax.f32 %v1395_v39, 0.0  ;;  %v1721_v44 = vmax.f32 %v1590_v55, 0.0  ;;  %v1717_v49 = vmax.f32 %v1584_v20, 0.0  ;;  %v1572_v52 = vadd.f32 %v2742_v36, %v1059_v31  ;;  %v2903_v39 = vld [vmem:[#allocation20_spill] sm:$0xff] }
 0x32b   : > { %1846 = vmatpush2.msra.mxu1 %v1732_v40  ;;  %1776 = vmatprep.subr.mxu0 %v1727_v0  ;;  %v1720_v0 = vmax.f32 %v1588_v23, 0.0  ;;  %v1711_v17 = vmax.f32 %v1387_v11, 0.0  ;;  %v1716_v2 = vmax.f32 %v1582_v5, 0.0  ;;  %v1375_v48 = vadd.f32 %v2732_v3, %v2758_v50  ;;  %v2908_v5 = vld [vmem:[#allocation24_spill] sm:$0xff] }
 0x32c   : > { %1847 = vmatprep.subr.mxu1 %v1729_v27  ;;  %1777 = vmatpush2.msra.mxu0 %v1726_v25  ;;  %v1715_v25 = vmax.f32 %v1391_v9, 0.0  ;;  %v1570_v13 = vadd.f32 %v2738_v56, %v2758_v50  ;;  %v1710_v22 = vmax.f32 %v1385_v61, 0.0  ;;  %v1713_v34 = vmax.f32 %v1580_v54, 0.0  ;;  %v2904_v27 = vld [vmem:[#allocation21_spill] sm:$0xff]  ;;  %v2909_v61 = vld [vmem:[#allocation39_spill] sm:$0xff] }
 0x32d   : > { %1848 = vmatpush2.msra.mxu1 %v1728_v42  ;;  %1778 = vmatprep.subr.mxu0 %v1723_v53  ;;  %v1371_v47 = vadd.f32 %v2728_v28, %v1049_v8  ;;  %v1568_v31 = vadd.f32 %v2734_v43, %v2758_v50  ;;  %v1707_v51 = vmax.f32 %v1381_v29, 0.0  ;;  %v1712_v36 = vmax.f32 %v1578_v6, 0.0  ;;  %v1034_v41 = vpop.permute.xlu1 %1033  ;;  %v2906_v42 = vld [vmem:[#allocation23_spill] sm:$0xff] }
 0x32e   : > { %1849 = vmatprep.subr.mxu1 %v1725_v10  ;;  %1779 = vmatpush2.msra.mxu0 %v1722_v21  ;;  %v1369_v7 = vadd.f32 %v2723_v32, %v1049_v8  ;;  %v1564_v3 = vadd.f32 %v2730_v58, %v1049_v8  ;;  %v1706_v15 = vmax.f32 %v1379_v18, 0.0  ;;  %v1709_v56 = vmax.f32 %v1574_v30, 0.0  ;;  %v2901_v58 = vld [vmem:[#allocation18_spill] sm:$0xff]  ;;  %v2907_v10 = vld [vmem:[#allocation41_spill] sm:$0xff]  ;;  %v2912_v18 = vld [vmem:[#allocation40_spill] sm:$0xff] }
 0x32f   : > { %1850 = vmatpush2.msra.mxu1 %v1724_v62  ;;  %1780 = vmatprep.subr.mxu0 %v1719_v26  ;;  %v1367_v4 = vadd.f32 %v2715_v24, %v1044_v16  ;;  %v1562_v28 = vadd.f32 %v2726_v45, %v1049_v8  ;;  %v1703_v46 = vmax.f32 %v1377_v35, 0.0  ;;  %v1708_v14 = vmax.f32 %v1572_v52, 0.0  ;;  %v1029_v45 = vpop.permute.xlu0 %1028  ;;  %v2913_v35 = vld [vmem:[#allocation35_spill] sm:$0xff] }
 0x330   : > { %1851 = vmatprep.subr.mxu1 %v1721_v44  ;;  %1781 = vmatpush2.msra.mxu0 %v1718_v38  ;;  %v1365_v50 = vadd.f32 %v2707_v59, %v1044_v16  ;;  %v1560_v43 = vadd.f32 %v2719_v33, %v1044_v16  ;;  %v1702_v60 = vmax.f32 %v1375_v48, 0.0  ;;  %v1705_v32 = vmax.f32 %v1570_v13, 0.0  ;;  %v2905_v33 = vld [vmem:[#allocation22_spill] sm:$0xff] }
 0x331   : > { %1852 = vmatpush2.msra.mxu1 %v1720_v0  ;;  %1782 = vmatprep.subr.mxu0 %v1715_v25  ;;  %v1361_v37 = vadd.f32 %v2901_v58, %v1039_v19  ;;  %v1558_v1 = vadd.f32 %v2902_v57, %v1044_v16  ;;  %v1699_v40 = vmax.f32 %v1371_v47, 0.0  ;;  %v1704_v24 = vmax.f32 %v1568_v31, 0.0  ;;  %v1024_v21 = vpop.permute.xlu1 %1023  ;;  %v2910_v38 = vld [vmem:[#allocation42_spill] sm:$0xff]  ;;  %v2911_v25 = vld [vmem:[#allocation37_spill] sm:$0xff]  ;;  %v2916_v47 = vld [vmem:[#allocation36_spill] sm:$0xff] }
 0x332   : > { %1853 = vmatprep.subr.mxu1 %v1717_v49  ;;  %1783 = vmatpush2.msra.mxu0 %v1714_v12  ;;  %v1359_v55 = vadd.f32 %v2903_v39, %v1039_v19  ;;  %v1554_v9 = vadd.f32 %v2904_v27, %v1039_v19  ;;  %v1698_v59 = vmax.f32 %v1369_v7, 0.0  ;;  %v1701_v23 = vmax.f32 %v1564_v3, 0.0  ;;  %v2918_v3 = vld [vmem:[#allocation34_spill] sm:$0xff]  ;;  %v2921_v58 = vld [vmem:[#allocation27_spill] sm:$0xff] }
 0x333   : > { %1854 = vmatpush2.msra.mxu1 %v1716_v2  ;;  %1784 = vmatprep.subr.mxu0 %v1711_v17  ;;  %v1357_v53 = vadd.f32 %v2905_v33, %v1034_v41  ;;  %v1552_v8 = vadd.f32 %v2906_v42, %v1039_v19  ;;  %v1695_v63 = vmax.f32 %v1367_v4, 0.0  ;;  %v1700_v20 = vmax.f32 %v1562_v28, 0.0  ;;  %v2914_v17 = vld [vmem:[#allocation38_spill] sm:$0xff]  ;;  %v1019_v13 = vpop.permute.xlu0 %1018 }
 0x334   : > { %1855 = vmatprep.subr.mxu1 %v1713_v34  ;;  %1785 = vmatpush2.msra.mxu0 %v1710_v22  ;;  %v1355_v11 = vadd.f32 %v2907_v10, %v1034_v41  ;;  %v1550_v26 = vadd.f32 %v2908_v5, %v1034_v41  ;;  %v1694_v62 = vmax.f32 %v1365_v50, 0.0  ;;  %v1697_v16 = vmax.f32 %v1560_v43, 0.0  ;;  %v2915_v22 = vld [vmem:[#allocation33_spill] sm:$0xff]  ;;  %v2920_v50 = vld [vmem:[#allocation32_spill] sm:$0xff]  ;;  %v2922_v57 = vld [vmem:[#allocation30_spill] sm:$0xff] }
 0x335   : > { %1856 = vmatpush2.msra.mxu1 %v1712_v36  ;;  %1786 = vmatprep.subr.mxu0 %v1707_v51  ;;  %v1351_v54 = vadd.f32 %v2909_v61, %v1029_v45  ;;  %v1548_v44 = vadd.f32 %v2910_v38, %v1034_v41  ;;  %v1691_v29 = vmax.f32 %v1361_v37, 0.0  ;;  %v1696_v6 = vmax.f32 %v1558_v1, 0.0  ;;  %v2917_v41 = vld [vmem:[#allocation31_spill] sm:$0xff]  ;;  %v1014_v28 = vpop.permute.xlu1 %1013  ;;  %v1734_v5 = vld [vmem:[%s2827_s7] sm:$0xff] }
 0x336   : > { %1857 = vmatprep.subr.mxu1 %v1709_v56  ;;  %1787 = vmatpush2.msra.mxu0 %v1706_v15  ;;  %v1349_v0 = vadd.f32 %v2911_v25, %v1029_v45  ;;  %v1544_v30 = vadd.f32 %v2912_v18, %v1029_v45  ;;  %v1690_v12 = vmax.f32 %v1359_v55, 0.0  ;;  %v1693_v49 = vmax.f32 %v1554_v9, 0.0  ;;  %v2924_v55 = vld [vmem:[#allocation28_spill] sm:$0xff] }
 0x337   : > { %1858 = vmatpush2.msra.mxu1 %v1708_v14  ;;  %1788 = vmatprep.subr.mxu0 %v1703_v46  ;;  %v1347_v52 = vadd.f32 %v2913_v35, %v1024_v21  ;;  %v1542_v2 = vadd.f32 %v2914_v17, %v1029_v45  ;;  %v1687_v19 = vmax.f32 %v1357_v53, 0.0  ;;  %v1692_v48 = vmax.f32 %v1552_v8, 0.0  ;;  %v2919_v46 = vld [vmem:[#allocation29_spill] sm:$0xff] }
 0x338   : > { %1859 = vmatprep.subr.mxu1 %v1705_v32  ;;  %1789 = vmatpush2.msra.mxu0 %v1702_v60  ;;  %v1345_v34 = vadd.f32 %v2915_v22, %v1024_v21  ;;  %v1540_v31 = vadd.f32 %v2916_v47, %v1024_v21  ;;  %v1686_v51 = vmax.f32 %v1355_v11, 0.0  ;;  %v1689_v36 = vmax.f32 %v1550_v26, 0.0  ;;  %v2923_v45 = vld [vmem:[#allocation25_spill] sm:$0xff] }
 0x339   : > { %1860 = vmatpush2.msra.mxu1 %v1704_v24  ;;  %1790 = vmatprep.subr.mxu0 %v1699_v40  ;;  %v1341_v7 = vadd.f32 %v2917_v41, %v1019_v13  ;;  %v1538_v15 = vadd.f32 %v2918_v3, %v1024_v21  ;;  %v1683_v56 = vmax.f32 %v1351_v54, 0.0  ;;  %v1688_v4 = vmax.f32 %v1548_v44, 0.0 }
 0x33a   : > { %1861 = vmatprep.subr.mxu1 %v1701_v23  ;;  %1791 = vmatpush2.msra.mxu0 %v1698_v59  ;;  %v1339_v14 = vadd.f32 %v2919_v46, %v1019_v13  ;;  %v1534_v43 = vadd.f32 %v2920_v50, %v1019_v13  ;;  %v1682_v60 = vmax.f32 %v1349_v0, 0.0  ;;  %v1685_v32 = vmax.f32 %v1544_v30, 0.0  ;;  %v2925_v23 = vld [vmem:[#allocation26_spill] sm:$0xff] }
 0x33b   : > { %1862 = vmatpush2.msra.mxu1 %v1700_v20  ;;  %1792 = vmatprep.subr.mxu0 %v1695_v63  ;;  %v1337_v37 = vadd.f32 %v2921_v58, %v1014_v28  ;;  %v1532_v1 = vadd.f32 %v2922_v57, %v1019_v13  ;;  %v1679_v40 = vmax.f32 %v1347_v52, 0.0  ;;  %v1684_v24 = vmax.f32 %v1542_v2, 0.0 }
 0x33c   : > { %1863 = vmatprep.subr.mxu1 %v1697_v16  ;;  %1793 = vmatpush2.msra.mxu0 %v1694_v62  ;;  %v1335_v39 = vadd.f32 %v2923_v45, %v1014_v28  ;;  %v1530_v27 = vadd.f32 %v2924_v55, %v1014_v28  ;;  %v1678_v9 = vmax.f32 %v1345_v34, 0.0  ;;  %v1681_v59 = vmax.f32 %v1540_v31, 0.0  ;;  %v1740_v62 = vpop.permute.xlu0 %1739 }
 0x33d   : > { %1864 = vmatpush2.msra.mxu1 %v1696_v6  ;;  %1794 = vmatprep.subr.mxu0 %v1691_v29  ;;  %v1528_v33 = vadd.f32 %v2925_v23, %v1014_v28  ;;  %v1675_v53 = vmax.f32 %v1341_v7, 0.0  ;;  %v1680_v42 = vmax.f32 %v1538_v15, 0.0  ;;  %v1674_v8 = vmax.f32 %v1339_v14, 0.0 }
 0x33e   : > { %1865 = vmatprep.subr.mxu1 %v1693_v49  ;;  %1795 = vmatpush2.msra.mxu0 %v1690_v12  ;;  %v1677_v63 = vmax.f32 %v1534_v43, 0.0  ;;  %v1671_v20 = vmax.f32 %v1337_v37, 0.0  ;;  %v1676_v21 = vmax.f32 %v1532_v1, 0.0  ;;  %v1670_v10 = vmax.f32 %v1335_v39, 0.0 }
 0x33f   : > { %1866 = vmatpush2.msra.mxu1 %v1692_v48  ;;  %1796 = vmatprep.subr.mxu0 %v1687_v19  ;;  %v1673_v11 = vmax.f32 %v1530_v27, 0.0  ;;  %v1672_v26 = vmax.f32 %v1528_v33, 0.0 }
 0x340   : > { %1867 = vmatprep.subr.mxu1 %v1689_v36  ;;  %1797 = vmatpush2.msra.mxu0 %v1686_v51 }
 0x341   : > { %1868 = vmatpush2.msra.mxu1 %v1688_v4  ;;  %1798 = vmatprep.subr.mxu0 %v1683_v56 }
 0x342   : > { %1869 = vmatprep.subr.mxu1 %v1685_v32  ;;  %1799 = vmatpush2.msra.mxu0 %v1682_v60 }
 0x343   : > { %1870 = vmatpush2.msra.mxu1 %v1684_v24  ;;  %1800 = vmatprep.subr.mxu0 %v1679_v40 }
 0x344   : > { %1871 = vmatprep.subr.mxu1 %v1681_v59  ;;  %1801 = vmatpush2.msra.mxu0 %v1678_v9 }
 0x345   : > { %1872 = vmatpush2.msra.mxu1 %v1680_v42  ;;  %1802 = vmatprep.subr.mxu0 %v1675_v53 }
 0x346   : > { %1873 = vmatprep.subr.mxu1 %v1677_v63  ;;  %1803 = vmatpush2.msra.mxu0 %v1674_v8 }
 0x347   : > { %1874 = vmatpush2.msra.mxu1 %v1676_v21  ;;  %1804 = vmatprep.subr.mxu0 %v1671_v20 }
 0x348   : > { %1875 = vmatprep.subr.mxu1 %v1673_v11  ;;  %1805 = vmatpush2.msra.mxu0 %v1670_v10 }
 0x349   : > { %1876 = vmatpush2.msra.mxu1 %v1672_v26  ;;  %1807 = vmatmul.mubr.f32.vlgmr.msra.gmra.mxu0 %v1734_v5 }
 0x34a   : > { %1878 = vmatmul.mubr.f32.vlgmr.msra.gmra.mxu1 %v1734_v5 }
 0x409   : > { %v1808_v16 = vpop.f32.mrf.mxu0 }
 0x40a   : > { %v1809_v61 = vadd.f32 %v1808_v16, %v1740_v62  ;;  %v1879_v54 = vpop.f32.mrf.mxu1 }
 0x40b   : > { %v1810_v38 = vpop.f32.mrf.mxu0  ;;  %v1880_v6 = vadd.f32 %v1879_v54, %v1740_v62 }
 0x40c   : > { %1884 = vst [vmem:[%s334_s15] sm:$0xff] %v1809_v61  ;;  %v1811_v44 = vadd.f32 %v1810_v38, %v1740_v62  ;;  %v1881_v29 = vpop.f32.mrf.mxu1 }
 0x40d   : > { %v1882_v25 = vadd.f32 %v1881_v29, %v1740_v62  ;;  %1886 = vst [vmem:[%s334_s15 + $0x10] sm:$0xff] %v1880_v6 }
 0x40e   : > { %1885 = vst [vmem:[%s334_s15 + $0x8] sm:$0xff] %v1811_v44 }
 0x40f   : > { %1887 = vst [vmem:[%s334_s15 + $0x18] sm:$0xff] %v1882_v25 }
 0x410 PF: > { %s19_s30 = sadd.s32 1, %s2061_s30  }
 0x411   : > { %p16_p4 = scmp.ge.s32.totalorder %s19_s30, 4  }
 0x413   :  { %18 = sbr.rel (!%p16_p4) target bundleno = 1 (0x1), region = 86 }

</bundles_post_ra>
